<compile_context>
chip_gen: v6e
topology: v6e:2x2x1
jax: 0.10.0
libtpu: 0.0.40
codegen_flags: <defaults>
</compile_context>

<pallas_src>
import jax
import jax.numpy as jnp
from jax import lax
from jax.experimental import pallas as pl
from jax.experimental.pallas import tpu as pltpu


def bilstm_kernel(emb_ref, wih_cat_ref, b_cat_ref, whh_f_ref, whh_b_ref,
                  out_ref, hn_ref, cn_ref,
                  gates_f_ref, gates_b_ref, fwd_ref, bwd_ref):
    TB, _E = emb_ref.shape                 # emb flattened to [T*B, E] by the wrapper
    _, B, H = hn_ref.shape                 # B already padded to a multiple of 8
    T = TB // B
    G = 4 * H

    # --- Hoisted input projection: both directions in ONE MXU pass -------------
    #   [T*B, E] @ [E, 8H] + [1, 8H]  (weights pre-transposed / fused in wrapper)
    gates_all = (jnp.dot(emb_ref[...], wih_cat_ref[...],
                         preferred_element_type=jnp.float32)
                 + b_cat_ref[...])                       # [T*B, 8H]
    gates_f_ref[...] = gates_all[:, :G]                  # lane-aligned split (4H = 128)
    gates_b_ref[...] = gates_all[:, G:]

    whh_f_t = whh_f_ref[...]                             # [H, 4H] (pre-transposed)
    whh_b_t = whh_b_ref[...]

    def cell_update(gates, c):
        # Full-vreg nonlinearities (EUP), slice the results afterwards.
        sig = jax.nn.sigmoid(gates)                      # [B, 4H]
        tnh = jnp.tanh(gates)
        i = sig[:, 0 * H:1 * H]
        f = sig[:, 1 * H:2 * H]
        g = tnh[:, 2 * H:3 * H]
        o = sig[:, 3 * H:4 * H]
        c_new = f * c + i * g
        h_new = o * jnp.tanh(c_new)
        return h_new, c_new

    h0 = jnp.zeros((B, H), jnp.float32)
    c0 = jnp.zeros((B, H), jnp.float32)

    # --- Interleaved fwd/bwd recurrence (pure recurrence: only W_hh dots) ------
    def body(t, carry):
        h_f, c_f, h_b, c_b = carry
        rf = pl.multiple_of(t * B, 8)                    # fwd timestep row offset
        rb = pl.multiple_of((T - 1 - t) * B, 8)          # bwd timestep row offset
        gf = gates_f_ref[pl.ds(rf, B), :] + jnp.dot(
            h_f, whh_f_t, preferred_element_type=jnp.float32)
        gb = gates_b_ref[pl.ds(rb, B), :] + jnp.dot(
            h_b, whh_b_t, preferred_element_type=jnp.float32)
        h_f, c_f = cell_update(gf, c_f)
        h_b, c_b = cell_update(gb, c_b)
        fwd_ref[pl.ds(rf, B), :] = h_f
        bwd_ref[pl.ds(rb, B), :] = h_b
        return (h_f, c_f, h_b, c_b)

    h_f, c_f, h_b, c_b = lax.fori_loop(0, T, body, (h0, c0, h0, c0), unroll=True)

    # One bulk vectorized sum + store (no per-step RMW on out_ref).
    out_ref[...] = fwd_ref[...] + bwd_ref[...]
    hn_ref[0] = h_f
    hn_ref[1] = h_b
    cn_ref[0] = c_f
    cn_ref[1] = c_b


def encoder_rnn_forward(input_ids, input_seqlen, params):
    """input_ids: int32 [T, B]. input_seqlen is unused by the reference forward
    (nn.LSTM is called without packing), so it is ignored here as well."""
    del input_seqlen
    emb_w = params["embedding"]                          # [vocab, E]
    embedded = emb_w[input_ids].astype(jnp.float32)      # [T, B, E] (dropout = identity, eval)

    T, B, E = embedded.shape
    H = params["whh_f"].shape[1]

    # Pad batch up to a full sublane group (8): free throughput, aligned slices.
    B_pad = max(8, ((B + 7) // 8) * 8)
    if B_pad != B:
        embedded = jnp.pad(embedded, ((0, 0), (0, B_pad - B), (0, 0)))
    emb2d = embedded.reshape(T * B_pad, E)               # flatten in XLA, not in-kernel

    # Pre-transpose weights; fuse the two directions' input projections into [E, 8H].
    wih_cat_t = jnp.concatenate([params["wih_f"].T, params["wih_b"].T], axis=1)  # [E, 8H]
    b_cat = jnp.concatenate([params["b_f"], params["b_b"]], axis=1)              # [1, 8H]
    whh_f_t = params["whh_f"].T                          # [H, 4H]
    whh_b_t = params["whh_b"].T                          # [H, 4H]

    vmem = pl.BlockSpec(memory_space=pltpu.MemorySpace.VMEM)
    out2d, h_n, c_n = pl.pallas_call(
        bilstm_kernel,
        out_shape=(
            jax.ShapeDtypeStruct((T * B_pad, H), jnp.float32),
            jax.ShapeDtypeStruct((2, B_pad, H), jnp.float32),
            jax.ShapeDtypeStruct((2, B_pad, H), jnp.float32),
        ),
        in_specs=[vmem] * 5,
        out_specs=(vmem, vmem, vmem),
        scratch_shapes=[
            pltpu.VMEM((T * B_pad, 4 * H), jnp.float32),  # precomputed fwd input gates
            pltpu.VMEM((T * B_pad, 4 * H), jnp.float32),  # precomputed bwd input gates
            pltpu.VMEM((T * B_pad, H), jnp.float32),      # fwd hidden states
            pltpu.VMEM((T * B_pad, H), jnp.float32),      # bwd hidden states
        ],
    )(emb2d, wih_cat_t, b_cat, whh_f_t, whh_b_t)

    out_sum = out2d.reshape(T, B_pad, H)[:, :B, :]
    h_n = h_n[:, :B, :]
    c_n = c_n[:, :B, :]
    # PyTorch: outputs[:, :, :H] + outputs[:, :, H:]  -> done in-kernel; hidden = (h_n, c_n)
    return out_sum, (h_n, c_n)


def _reference_forward(input_ids, params):
    """Pure-JAX reference with identical semantics (for validation)."""
    emb = params["embedding"][input_ids].astype(jnp.float32)   # [T, B, E]
    H = params["whh_f"].shape[1]

    def make_scan(wih, whh, b):
        def step(carry, x):
            h, c = carry
            gates = x @ wih.T + h @ whh.T + b
            i = jax.nn.sigmoid(gates[:, 0 * H:1 * H])
            f = jax.nn.sigmoid(gates[:, 1 * H:2 * H])
            g = jnp.tanh(gates[:, 2 * H:3 * H])
            o = jax.nn.sigmoid(gates[:, 3 * H:4 * H])
            c = f * c + i * g
            h = o * jnp.tanh(c)
            return (h, c), h
        return step

    B = emb.shape[1]
    h0 = jnp.zeros((B, H), jnp.float32)
    c0 = jnp.zeros((B, H), jnp.float32)
    (h_f, c_f), out_f = lax.scan(make_scan(params["wih_f"], params["whh_f"], params["b_f"]),
                                 (h0, c0), emb)
    (h_b, c_b), out_b = lax.scan(make_scan(params["wih_b"], params["whh_b"], params["b_b"]),
                                 (h0, c0), emb[::-1])
    out_b = out_b[::-1]
    return out_f + out_b, (jnp.stack([h_f, h_b]), jnp.stack([c_f, c_b]))


def init_params(key, vocab_size, emb_size, hidden_size):
    ks = jax.random.split(key, 7)
    # Xavier-uniform embedding (as in the module).
    bound_e = (6.0 / (vocab_size + emb_size)) ** 0.5
    emb = jax.random.uniform(ks[0], (vocab_size, emb_size), jnp.float32, -bound_e, bound_e)
    # PyTorch LSTM default init: U(-1/sqrt(H), 1/sqrt(H)).
    k = 1.0 / (hidden_size ** 0.5)
    u = lambda kk, shape: jax.random.uniform(kk, shape, jnp.float32, -k, k)
    fourH = 4 * hidden_size
    return {
        "embedding": emb,
        "wih_f": u(ks[1], (fourH, emb_size)),
        "whh_f": u(ks[2], (fourH, hidden_size)),
        "b_f":   u(ks[3], (1, fourH)) * 2.0,   # bias_ih + bias_hh combined
        "wih_b": u(ks[4], (fourH, emb_size)),
        "whh_b": u(ks[5], (fourH, hidden_size)),
        "b_b":   u(ks[6], (1, fourH)) * 2.0,
    }


if __name__ == "__main__":
    # cfg: input_size=16, src_embedding_size=32, hidden_size=32,
    #      encoder_n_layers=1, cell_type='LSTM', dropout (eval -> identity)
    T, B = 8, 2
    VOCAB, E, H = 16, 32, 32

    key = jax.random.PRNGKey(0)
    k_inp, k_par = jax.random.split(key)
    params = init_params(k_par, VOCAB, E, H)

    input_ids = jax.random.randint(k_inp, (T, B), 0, VOCAB, dtype=jnp.int32)
    input_seqlen = jnp.full((B,), T, dtype=jnp.int32)

    outputs, (h_n, c_n) = encoder_rnn_forward(input_ids, input_seqlen, params)
    jax.block_until_ready((outputs, h_n, c_n))

    ref_out, (ref_h, ref_c) = _reference_forward(input_ids, params)
    assert outputs.shape == (T, B, H) and h_n.shape == (2, B, H) and c_n.shape == (2, B, H)
    assert jnp.allclose(outputs, ref_out, atol=1e-3, rtol=1e-3)
    assert jnp.allclose(h_n, ref_h, atol=1e-3, rtol=1e-3)
    assert jnp.allclose(c_n, ref_c, atol=1e-3, rtol=1e-3)

    print("KERNEL_OK")
</pallas_src>

<mosaic_0001>
module attributes {stable_mosaic.version = 11 : i64} {
  func.func @bilstm_kernel(%arg0: memref<64x32xf32, #tpu.memory_space<vmem>>, %arg1: memref<32x256xf32, #tpu.memory_space<vmem>>, %arg2: memref<1x256xf32, #tpu.memory_space<vmem>>, %arg3: memref<32x128xf32, #tpu.memory_space<vmem>>, %arg4: memref<32x128xf32, #tpu.memory_space<vmem>>, %arg5: memref<64x32xf32, #tpu.memory_space<vmem>>, %arg6: memref<2x8x32xf32, #tpu.memory_space<vmem>>, %arg7: memref<2x8x32xf32, #tpu.memory_space<vmem>>, %arg8: memref<64x128xf32, #tpu.memory_space<vmem>>, %arg9: memref<64x128xf32, #tpu.memory_space<vmem>>, %arg10: memref<64x32xf32, #tpu.memory_space<vmem>>, %arg11: memref<64x32xf32, #tpu.memory_space<vmem>>) attributes {dimension_semantics = [], scalar_prefetch = 0 : i64, scratch_operands = 4 : i64, tpu.core_type = #tpu.core_type<tc>} {
    %c0 = arith.constant 0 : index
    %c0_0 = arith.constant 0 : index
    %0 = vector.load %arg0[%c0, %c0_0] : memref<64x32xf32, #tpu.memory_space<vmem>>, vector<64x32xf32>
    %c0_1 = arith.constant 0 : index
    %c0_2 = arith.constant 0 : index
    %1 = vector.load %arg1[%c0_1, %c0_2] : memref<32x256xf32, #tpu.memory_space<vmem>>, vector<32x256xf32>
    %cst = arith.constant dense<0.000000e+00> : vector<64x256xf32>
    %2 = tpu.matmul %0, %1, %cst {dimension_numbers = #tpu.dot_dimension_numbers<[1], [0], [0], [1], [0, 0, 1, 1], [], []>} : vector<64x32xf32>, vector<32x256xf32>, vector<64x256xf32> -> vector<64x256xf32>
    %c0_3 = arith.constant 0 : index
    %c0_4 = arith.constant 0 : index
    %3 = vector.load %arg2[%c0_3, %c0_4] : memref<1x256xf32, #tpu.memory_space<vmem>>, vector<1x256xf32>
    %4 = vector.broadcast %3 : vector<1x256xf32> to vector<64x256xf32>
    %5 = arith.addf %2, %4 : vector<64x256xf32>
    %6 = vector.extract_strided_slice %5 {offsets = [0, 0], sizes = [64, 128], strides = [1, 1]} : vector<64x256xf32> to vector<64x128xf32>
    %c0_5 = arith.constant 0 : index
    %c0_6 = arith.constant 0 : index
    %7 = vector.load %arg8[%c0_5, %c0_6] : memref<64x128xf32, #tpu.memory_space<vmem>>, vector<64x128xf32>
    tpu.vector_store %arg8[%c0_5, %c0_6], %6 {strides = array<i32>} : memref<64x128xf32, #tpu.memory_space<vmem>>, vector<64x128xf32>,
    %8 = vector.extract_strided_slice %5 {offsets = [0, 128], sizes = [64, 128], strides = [1, 1]} : vector<64x256xf32> to vector<64x128xf32>
    %c0_7 = arith.constant 0 : index
    %c0_8 = arith.constant 0 : index
    %9 = vector.load %arg9[%c0_7, %c0_8] : memref<64x128xf32, #tpu.memory_space<vmem>>, vector<64x128xf32>
    tpu.vector_store %arg9[%c0_7, %c0_8], %8 {strides = array<i32>} : memref<64x128xf32, #tpu.memory_space<vmem>>, vector<64x128xf32>,
    %c0_9 = arith.constant 0 : index
    %c0_10 = arith.constant 0 : index
    %10 = vector.load %arg3[%c0_9, %c0_10] : memref<32x128xf32, #tpu.memory_space<vmem>>, vector<32x128xf32>
    %c0_11 = arith.constant 0 : index
    %c0_12 = arith.constant 0 : index
    %11 = vector.load %arg4[%c0_11, %c0_12] : memref<32x128xf32, #tpu.memory_space<vmem>>, vector<32x128xf32>
    %cst_13 = arith.constant 0.000000e+00 : f32
    %12 = vector.broadcast %cst_13 : f32 to vector<8x32xf32>
    %cst_14 = arith.constant 0.000000e+00 : f32
    %13 = vector.broadcast %cst_14 : f32 to vector<8x32xf32>
    %c0_i32 = arith.constant 0 : i32
    %c8_i32 = arith.constant 8 : i32
    %14 = arith.muli %c0_i32, %c8_i32 : i32
    %15 = tpu.assume_multiple %14, 8 : i32
    %c7_i32 = arith.constant 7 : i32
    %16 = arith.subi %c7_i32, %c0_i32 : i32
    %c8_i32_15 = arith.constant 8 : i32
    %17 = arith.muli %16, %c8_i32_15 : i32
    %18 = tpu.assume_multiple %17, 8 : i32
    %19 = arith.index_cast %15 : i32 to index
    %c0_16 = arith.constant 0 : index
    %20 = vector.load %arg8[%19, %c0_16] : memref<64x128xf32, #tpu.memory_space<vmem>>, vector<8x128xf32>
    %cst_17 = arith.constant dense<0.000000e+00> : vector<8x128xf32>
    %21 = tpu.matmul %12, %10, %cst_17 {dimension_numbers = #tpu.dot_dimension_numbers<[1], [0], [0], [1], [0, 0, 1, 1], [], []>} : vector<8x32xf32>, vector<32x128xf32>, vector<8x128xf32> -> vector<8x128xf32>
    %22 = arith.addf %20, %21 : vector<8x128xf32>
    %23 = arith.index_cast %18 : i32 to index
    %c0_18 = arith.constant 0 : index
    %24 = vector.load %arg9[%23, %c0_18] : memref<64x128xf32, #tpu.memory_space<vmem>>, vector<8x128xf32>
    %cst_19 = arith.constant dense<0.000000e+00> : vector<8x128xf32>
    %25 = tpu.matmul %12, %11, %cst_19 {dimension_numbers = #tpu.dot_dimension_numbers<[1], [0], [0], [1], [0, 0, 1, 1], [], []>} : vector<8x32xf32>, vector<32x128xf32>, vector<8x128xf32> -> vector<8x128xf32>
    %26 = arith.addf %24, %25 : vector<8x128xf32>
    %27 = arith.negf %22 : vector<8x128xf32>
    %28 = math.exp %27 : vector<8x128xf32>
    %cst_20 = arith.constant 1.000000e+00 : f32
    %29 = vector.broadcast %cst_20 : f32 to vector<8x128xf32>
    %30 = arith.addf %29, %28 : vector<8x128xf32>
    %31 = arith.divf %29, %30 : vector<8x128xf32>
    %32 = math.tanh %22 : vector<8x128xf32>
    %33 = vector.extract_strided_slice %31 {offsets = [0, 0], sizes = [8, 32], strides = [1, 1]} : vector<8x128xf32> to vector<8x32xf32>
    %34 = vector.extract_strided_slice %31 {offsets = [0, 32], sizes = [8, 32], strides = [1, 1]} : vector<8x128xf32> to vector<8x32xf32>
    %35 = vector.extract_strided_slice %32 {offsets = [0, 64], sizes = [8, 32], strides = [1, 1]} : vector<8x128xf32> to vector<8x32xf32>
    %36 = vector.extract_strided_slice %31 {offsets = [0, 96], sizes = [8, 32], strides = [1, 1]} : vector<8x128xf32> to vector<8x32xf32>
    %37 = arith.mulf %34, %13 : vector<8x32xf32>
    %38 = arith.mulf %33, %35 : vector<8x32xf32>
    %39 = arith.addf %37, %38 : vector<8x32xf32>
    %40 = math.tanh %39 : vector<8x32xf32>
    %41 = arith.mulf %36, %40 : vector<8x32xf32>
    %42 = arith.negf %26 : vector<8x128xf32>
    %43 = math.exp %42 : vector<8x128xf32>
    %cst_21 = arith.constant 1.000000e+00 : f32
    %44 = vector.broadcast %cst_21 : f32 to vector<8x128xf32>
    %45 = arith.addf %44, %43 : vector<8x128xf32>
    %46 = arith.divf %44, %45 : vector<8x128xf32>
    %47 = math.tanh %26 : vector<8x128xf32>
    %48 = vector.extract_strided_slice %46 {offsets = [0, 0], sizes = [8, 32], strides = [1, 1]} : vector<8x128xf32> to vector<8x32xf32>
    %49 = vector.extract_strided_slice %46 {offsets = [0, 32], sizes = [8, 32], strides = [1, 1]} : vector<8x128xf32> to vector<8x32xf32>
    %50 = vector.extract_strided_slice %47 {offsets = [0, 64], sizes = [8, 32], strides = [1, 1]} : vector<8x128xf32> to vector<8x32xf32>
    %51 = vector.extract_strided_slice %46 {offsets = [0, 96], sizes = [8, 32], strides = [1, 1]} : vector<8x128xf32> to vector<8x32xf32>
    %52 = arith.mulf %49, %13 : vector<8x32xf32>
    %53 = arith.mulf %48, %50 : vector<8x32xf32>
    %54 = arith.addf %52, %53 : vector<8x32xf32>
    %55 = math.tanh %54 : vector<8x32xf32>
    %56 = arith.mulf %51, %55 : vector<8x32xf32>
    %57 = arith.index_cast %15 : i32 to index
    %c0_22 = arith.constant 0 : index
    %58 = vector.load %arg10[%57, %c0_22] : memref<64x32xf32, #tpu.memory_space<vmem>>, vector<8x32xf32>
    tpu.vector_store %arg10[%57, %c0_22], %41 {strides = array<i32>} : memref<64x32xf32, #tpu.memory_space<vmem>>, vector<8x32xf32>,
    %59 = arith.index_cast %18 : i32 to index
    %c0_23 = arith.constant 0 : index
    %60 = vector.load %arg11[%59, %c0_23] : memref<64x32xf32, #tpu.memory_space<vmem>>, vector<8x32xf32>
    tpu.vector_store %arg11[%59, %c0_23], %56 {strides = array<i32>} : memref<64x32xf32, #tpu.memory_space<vmem>>, vector<8x32xf32>,
    %c1_i32 = arith.constant 1 : i32
    %c8_i32_24 = arith.constant 8 : i32
    %61 = arith.muli %c1_i32, %c8_i32_24 : i32
    %62 = tpu.assume_multiple %61, 8 : i32
    %c7_i32_25 = arith.constant 7 : i32
    %63 = arith.subi %c7_i32_25, %c1_i32 : i32
    %c8_i32_26 = arith.constant 8 : i32
    %64 = arith.muli %63, %c8_i32_26 : i32
    %65 = tpu.assume_multiple %64, 8 : i32
    %66 = arith.index_cast %62 : i32 to index
    %c0_27 = arith.constant 0 : index
    %67 = vector.load %arg8[%66, %c0_27] : memref<64x128xf32, #tpu.memory_space<vmem>>, vector<8x128xf32>
    %cst_28 = arith.constant dense<0.000000e+00> : vector<8x128xf32>
    %68 = tpu.matmul %41, %10, %cst_28 {dimension_numbers = #tpu.dot_dimension_numbers<[1], [0], [0], [1], [0, 0, 1, 1], [], []>} : vector<8x32xf32>, vector<32x128xf32>, vector<8x128xf32> -> vector<8x128xf32>
    %69 = arith.addf %67, %68 : vector<8x128xf32>
    %70 = arith.index_cast %65 : i32 to index
    %c0_29 = arith.constant 0 : index
    %71 = vector.load %arg9[%70, %c0_29] : memref<64x128xf32, #tpu.memory_space<vmem>>, vector<8x128xf32>
    %cst_30 = arith.constant dense<0.000000e+00> : vector<8x128xf32>
    %72 = tpu.matmul %56, %11, %cst_30 {dimension_numbers = #tpu.dot_dimension_numbers<[1], [0], [0], [1], [0, 0, 1, 1], [], []>} : vector<8x32xf32>, vector<32x128xf32>, vector<8x128xf32> -> vector<8x128xf32>
    %73 = arith.addf %71, %72 : vector<8x128xf32>
    %74 = arith.negf %69 : vector<8x128xf32>
    %75 = math.exp %74 : vector<8x128xf32>
    %cst_31 = arith.constant 1.000000e+00 : f32
    %76 = vector.broadcast %cst_31 : f32 to vector<8x128xf32>
    %77 = arith.addf %76, %75 : vector<8x128xf32>
    %78 = arith.divf %76, %77 : vector<8x128xf32>
    %79 = math.tanh %69 : vector<8x128xf32>
    %80 = vector.extract_strided_slice %78 {offsets = [0, 0], sizes = [8, 32], strides = [1, 1]} : vector<8x128xf32> to vector<8x32xf32>
    %81 = vector.extract_strided_slice %78 {offsets = [0, 32], sizes = [8, 32], strides = [1, 1]} : vector<8x128xf32> to vector<8x32xf32>
    %82 = vector.extract_strided_slice %79 {offsets = [0, 64], sizes = [8, 32], strides = [1, 1]} : vector<8x128xf32> to vector<8x32xf32>
    %83 = vector.extract_strided_slice %78 {offsets = [0, 96], sizes = [8, 32], strides = [1, 1]} : vector<8x128xf32> to vector<8x32xf32>
    %84 = arith.mulf %81, %39 : vector<8x32xf32>
    %85 = arith.mulf %80, %82 : vector<8x32xf32>
    %86 = arith.addf %84, %85 : vector<8x32xf32>
    %87 = math.tanh %86 : vector<8x32xf32>
    %88 = arith.mulf %83, %87 : vector<8x32xf32>
    %89 = arith.negf %73 : vector<8x128xf32>
    %90 = math.exp %89 : vector<8x128xf32>
    %cst_32 = arith.constant 1.000000e+00 : f32
    %91 = vector.broadcast %cst_32 : f32 to vector<8x128xf32>
    %92 = arith.addf %91, %90 : vector<8x128xf32>
    %93 = arith.divf %91, %92 : vector<8x128xf32>
    %94 = math.tanh %73 : vector<8x128xf32>
    %95 = vector.extract_strided_slice %93 {offsets = [0, 0], sizes = [8, 32], strides = [1, 1]} : vector<8x128xf32> to vector<8x32xf32>
    %96 = vector.extract_strided_slice %93 {offsets = [0, 32], sizes = [8, 32], strides = [1, 1]} : vector<8x128xf32> to vector<8x32xf32>
    %97 = vector.extract_strided_slice %94 {offsets = [0, 64], sizes = [8, 32], strides = [1, 1]} : vector<8x128xf32> to vector<8x32xf32>
    %98 = vector.extract_strided_slice %93 {offsets = [0, 96], sizes = [8, 32], strides = [1, 1]} : vector<8x128xf32> to vector<8x32xf32>
    %99 = arith.mulf %96, %54 : vector<8x32xf32>
    %100 = arith.mulf %95, %97 : vector<8x32xf32>
    %101 = arith.addf %99, %100 : vector<8x32xf32>
    %102 = math.tanh %101 : vector<8x32xf32>
    %103 = arith.mulf %98, %102 : vector<8x32xf32>
    %104 = arith.index_cast %62 : i32 to index
    %c0_33 = arith.constant 0 : index
    %105 = vector.load %arg10[%104, %c0_33] : memref<64x32xf32, #tpu.memory_space<vmem>>, vector<8x32xf32>
    tpu.vector_store %arg10[%104, %c0_33], %88 {strides = array<i32>} : memref<64x32xf32, #tpu.memory_space<vmem>>, vector<8x32xf32>,
    %106 = arith.index_cast %65 : i32 to index
    %c0_34 = arith.constant 0 : index
    %107 = vector.load %arg11[%106, %c0_34] : memref<64x32xf32, #tpu.memory_space<vmem>>, vector<8x32xf32>
    tpu.vector_store %arg11[%106, %c0_34], %103 {strides = array<i32>} : memref<64x32xf32, #tpu.memory_space<vmem>>, vector<8x32xf32>,
    %c2_i32 = arith.constant 2 : i32
    %c8_i32_35 = arith.constant 8 : i32
    %108 = arith.muli %c2_i32, %c8_i32_35 : i32
    %109 = tpu.assume_multiple %108, 8 : i32
    %c7_i32_36 = arith.constant 7 : i32
    %110 = arith.subi %c7_i32_36, %c2_i32 : i32
    %c8_i32_37 = arith.constant 8 : i32
    %111 = arith.muli %110, %c8_i32_37 : i32
    %112 = tpu.assume_multiple %111, 8 : i32
    %113 = arith.index_cast %109 : i32 to index
    %c0_38 = arith.constant 0 : index
    %114 = vector.load %arg8[%113, %c0_38] : memref<64x128xf32, #tpu.memory_space<vmem>>, vector<8x128xf32>
    %cst_39 = arith.constant dense<0.000000e+00> : vector<8x128xf32>
    %115 = tpu.matmul %88, %10, %cst_39 {dimension_numbers = #tpu.dot_dimension_numbers<[1], [0], [0], [1], [0, 0, 1, 1], [], []>} : vector<8x32xf32>, vector<32x128xf32>, vector<8x128xf32> -> vector<8x128xf32>
    %116 = arith.addf %114, %115 : vector<8x128xf32>
    %117 = arith.index_cast %112 : i32 to index
    %c0_40 = arith.constant 0 : index
    %118 = vector.load %arg9[%117, %c0_40] : memref<64x128xf32, #tpu.memory_space<vmem>>, vector<8x128xf32>
    %cst_41 = arith.constant dense<0.000000e+00> : vector<8x128xf32>
    %119 = tpu.matmul %103, %11, %cst_41 {dimension_numbers = #tpu.dot_dimension_numbers<[1], [0], [0], [1], [0, 0, 1, 1], [], []>} : vector<8x32xf32>, vector<32x128xf32>, vector<8x128xf32> -> vector<8x128xf32>
    %120 = arith.addf %118, %119 : vector<8x128xf32>
    %121 = arith.negf %116 : vector<8x128xf32>
    %122 = math.exp %121 : vector<8x128xf32>
    %cst_42 = arith.constant 1.000000e+00 : f32
    %123 = vector.broadcast %cst_42 : f32 to vector<8x128xf32>
    %124 = arith.addf %123, %122 : vector<8x128xf32>
    %125 = arith.divf %123, %124 : vector<8x128xf32>
    %126 = math.tanh %116 : vector<8x128xf32>
    %127 = vector.extract_strided_slice %125 {offsets = [0, 0], sizes = [8, 32], strides = [1, 1]} : vector<8x128xf32> to vector<8x32xf32>
    %128 = vector.extract_strided_slice %125 {offsets = [0, 32], sizes = [8, 32], strides = [1, 1]} : vector<8x128xf32> to vector<8x32xf32>
    %129 = vector.extract_strided_slice %126 {offsets = [0, 64], sizes = [8, 32], strides = [1, 1]} : vector<8x128xf32> to vector<8x32xf32>
    %130 = vector.extract_strided_slice %125 {offsets = [0, 96], sizes = [8, 32], strides = [1, 1]} : vector<8x128xf32> to vector<8x32xf32>
    %131 = arith.mulf %128, %86 : vector<8x32xf32>
    %132 = arith.mulf %127, %129 : vector<8x32xf32>
    %133 = arith.addf %131, %132 : vector<8x32xf32>
    %134 = math.tanh %133 : vector<8x32xf32>
    %135 = arith.mulf %130, %134 : vector<8x32xf32>
    %136 = arith.negf %120 : vector<8x128xf32>
    %137 = math.exp %136 : vector<8x128xf32>
    %cst_43 = arith.constant 1.000000e+00 : f32
    %138 = vector.broadcast %cst_43 : f32 to vector<8x128xf32>
    %139 = arith.addf %138, %137 : vector<8x128xf32>
    %140 = arith.divf %138, %139 : vector<8x128xf32>
    %141 = math.tanh %120 : vector<8x128xf32>
    %142 = vector.extract_strided_slice %140 {offsets = [0, 0], sizes = [8, 32], strides = [1, 1]} : vector<8x128xf32> to vector<8x32xf32>
    %143 = vector.extract_strided_slice %140 {offsets = [0, 32], sizes = [8, 32], strides = [1, 1]} : vector<8x128xf32> to vector<8x32xf32>
    %144 = vector.extract_strided_slice %141 {offsets = [0, 64], sizes = [8, 32], strides = [1, 1]} : vector<8x128xf32> to vector<8x32xf32>
    %145 = vector.extract_strided_slice %140 {offsets = [0, 96], sizes = [8, 32], strides = [1, 1]} : vector<8x128xf32> to vector<8x32xf32>
    %146 = arith.mulf %143, %101 : vector<8x32xf32>
    %147 = arith.mulf %142, %144 : vector<8x32xf32>
    %148 = arith.addf %146, %147 : vector<8x32xf32>
    %149 = math.tanh %148 : vector<8x32xf32>
    %150 = arith.mulf %145, %149 : vector<8x32xf32>
    %151 = arith.index_cast %109 : i32 to index
    %c0_44 = arith.constant 0 : index
    %152 = vector.load %arg10[%151, %c0_44] : memref<64x32xf32, #tpu.memory_space<vmem>>, vector<8x32xf32>
    tpu.vector_store %arg10[%151, %c0_44], %135 {strides = array<i32>} : memref<64x32xf32, #tpu.memory_space<vmem>>, vector<8x32xf32>,
    %153 = arith.index_cast %112 : i32 to index
    %c0_45 = arith.constant 0 : index
    %154 = vector.load %arg11[%153, %c0_45] : memref<64x32xf32, #tpu.memory_space<vmem>>, vector<8x32xf32>
    tpu.vector_store %arg11[%153, %c0_45], %150 {strides = array<i32>} : memref<64x32xf32, #tpu.memory_space<vmem>>, vector<8x32xf32>,
    %c3_i32 = arith.constant 3 : i32
    %c8_i32_46 = arith.constant 8 : i32
    %155 = arith.muli %c3_i32, %c8_i32_46 : i32
    %156 = tpu.assume_multiple %155, 8 : i32
    %c7_i32_47 = arith.constant 7 : i32
    %157 = arith.subi %c7_i32_47, %c3_i32 : i32
    %c8_i32_48 = arith.constant 8 : i32
    %158 = arith.muli %157, %c8_i32_48 : i32
    %159 = tpu.assume_multiple %158, 8 : i32
    %160 = arith.index_cast %156 : i32 to index
    %c0_49 = arith.constant 0 : index
    %161 = vector.load %arg8[%160, %c0_49] : memref<64x128xf32, #tpu.memory_space<vmem>>, vector<8x128xf32>
    %cst_50 = arith.constant dense<0.000000e+00> : vector<8x128xf32>
    %162 = tpu.matmul %135, %10, %cst_50 {dimension_numbers = #tpu.dot_dimension_numbers<[1], [0], [0], [1], [0, 0, 1, 1], [], []>} : vector<8x32xf32>, vector<32x128xf32>, vector<8x128xf32> -> vector<8x128xf32>
    %163 = arith.addf %161, %162 : vector<8x128xf32>
    %164 = arith.index_cast %159 : i32 to index
    %c0_51 = arith.constant 0 : index
    %165 = vector.load %arg9[%164, %c0_51] : memref<64x128xf32, #tpu.memory_space<vmem>>, vector<8x128xf32>
    %cst_52 = arith.constant dense<0.000000e+00> : vector<8x128xf32>
    %166 = tpu.matmul %150, %11, %cst_52 {dimension_numbers = #tpu.dot_dimension_numbers<[1], [0], [0], [1], [0, 0, 1, 1], [], []>} : vector<8x32xf32>, vector<32x128xf32>, vector<8x128xf32> -> vector<8x128xf32>
    %167 = arith.addf %165, %166 : vector<8x128xf32>
    %168 = arith.negf %163 : vector<8x128xf32>
    %169 = math.exp %168 : vector<8x128xf32>
    %cst_53 = arith.constant 1.000000e+00 : f32
    %170 = vector.broadcast %cst_53 : f32 to vector<8x128xf32>
    %171 = arith.addf %170, %169 : vector<8x128xf32>
    %172 = arith.divf %170, %171 : vector<8x128xf32>
    %173 = math.tanh %163 : vector<8x128xf32>
    %174 = vector.extract_strided_slice %172 {offsets = [0, 0], sizes = [8, 32], strides = [1, 1]} : vector<8x128xf32> to vector<8x32xf32>
    %175 = vector.extract_strided_slice %172 {offsets = [0, 32], sizes = [8, 32], strides = [1, 1]} : vector<8x128xf32> to vector<8x32xf32>
    %176 = vector.extract_strided_slice %173 {offsets = [0, 64], sizes = [8, 32], strides = [1, 1]} : vector<8x128xf32> to vector<8x32xf32>
    %177 = vector.extract_strided_slice %172 {offsets = [0, 96], sizes = [8, 32], strides = [1, 1]} : vector<8x128xf32> to vector<8x32xf32>
    %178 = arith.mulf %175, %133 : vector<8x32xf32>
    %179 = arith.mulf %174, %176 : vector<8x32xf32>
    %180 = arith.addf %178, %179 : vector<8x32xf32>
    %181 = math.tanh %180 : vector<8x32xf32>
    %182 = arith.mulf %177, %181 : vector<8x32xf32>
    %183 = arith.negf %167 : vector<8x128xf32>
    %184 = math.exp %183 : vector<8x128xf32>
    %cst_54 = arith.constant 1.000000e+00 : f32
    %185 = vector.broadcast %cst_54 : f32 to vector<8x128xf32>
    %186 = arith.addf %185, %184 : vector<8x128xf32>
    %187 = arith.divf %185, %186 : vector<8x128xf32>
    %188 = math.tanh %167 : vector<8x128xf32>
    %189 = vector.extract_strided_slice %187 {offsets = [0, 0], sizes = [8, 32], strides = [1, 1]} : vector<8x128xf32> to vector<8x32xf32>
    %190 = vector.extract_strided_slice %187 {offsets = [0, 32], sizes = [8, 32], strides = [1, 1]} : vector<8x128xf32> to vector<8x32xf32>
    %191 = vector.extract_strided_slice %188 {offsets = [0, 64], sizes = [8, 32], strides = [1, 1]} : vector<8x128xf32> to vector<8x32xf32>
    %192 = vector.extract_strided_slice %187 {offsets = [0, 96], sizes = [8, 32], strides = [1, 1]} : vector<8x128xf32> to vector<8x32xf32>
    %193 = arith.mulf %190, %148 : vector<8x32xf32>
    %194 = arith.mulf %189, %191 : vector<8x32xf32>
    %195 = arith.addf %193, %194 : vector<8x32xf32>
    %196 = math.tanh %195 : vector<8x32xf32>
    %197 = arith.mulf %192, %196 : vector<8x32xf32>
    %198 = arith.index_cast %156 : i32 to index
    %c0_55 = arith.constant 0 : index
    %199 = vector.load %arg10[%198, %c0_55] : memref<64x32xf32, #tpu.memory_space<vmem>>, vector<8x32xf32>
    tpu.vector_store %arg10[%198, %c0_55], %182 {strides = array<i32>} : memref<64x32xf32, #tpu.memory_space<vmem>>, vector<8x32xf32>,
    %200 = arith.index_cast %159 : i32 to index
    %c0_56 = arith.constant 0 : index
    %201 = vector.load %arg11[%200, %c0_56] : memref<64x32xf32, #tpu.memory_space<vmem>>, vector<8x32xf32>
    tpu.vector_store %arg11[%200, %c0_56], %197 {strides = array<i32>} : memref<64x32xf32, #tpu.memory_space<vmem>>, vector<8x32xf32>,
    %c4_i32 = arith.constant 4 : i32
    %c8_i32_57 = arith.constant 8 : i32
    %202 = arith.muli %c4_i32, %c8_i32_57 : i32
    %203 = tpu.assume_multiple %202, 8 : i32
    %c7_i32_58 = arith.constant 7 : i32
    %204 = arith.subi %c7_i32_58, %c4_i32 : i32
    %c8_i32_59 = arith.constant 8 : i32
    %205 = arith.muli %204, %c8_i32_59 : i32
    %206 = tpu.assume_multiple %205, 8 : i32
    %207 = arith.index_cast %203 : i32 to index
    %c0_60 = arith.constant 0 : index
    %208 = vector.load %arg8[%207, %c0_60] : memref<64x128xf32, #tpu.memory_space<vmem>>, vector<8x128xf32>
    %cst_61 = arith.constant dense<0.000000e+00> : vector<8x128xf32>
    %209 = tpu.matmul %182, %10, %cst_61 {dimension_numbers = #tpu.dot_dimension_numbers<[1], [0], [0], [1], [0, 0, 1, 1], [], []>} : vector<8x32xf32>, vector<32x128xf32>, vector<8x128xf32> -> vector<8x128xf32>
    %210 = arith.addf %208, %209 : vector<8x128xf32>
    %211 = arith.index_cast %206 : i32 to index
    %c0_62 = arith.constant 0 : index
    %212 = vector.load %arg9[%211, %c0_62] : memref<64x128xf32, #tpu.memory_space<vmem>>, vector<8x128xf32>
    %cst_63 = arith.constant dense<0.000000e+00> : vector<8x128xf32>
    %213 = tpu.matmul %197, %11, %cst_63 {dimension_numbers = #tpu.dot_dimension_numbers<[1], [0], [0], [1], [0, 0, 1, 1], [], []>} : vector<8x32xf32>, vector<32x128xf32>, vector<8x128xf32> -> vector<8x128xf32>
    %214 = arith.addf %212, %213 : vector<8x128xf32>
    %215 = arith.negf %210 : vector<8x128xf32>
    %216 = math.exp %215 : vector<8x128xf32>
    %cst_64 = arith.constant 1.000000e+00 : f32
    %217 = vector.broadcast %cst_64 : f32 to vector<8x128xf32>
    %218 = arith.addf %217, %216 : vector<8x128xf32>
    %219 = arith.divf %217, %218 : vector<8x128xf32>
    %220 = math.tanh %210 : vector<8x128xf32>
    %221 = vector.extract_strided_slice %219 {offsets = [0, 0], sizes = [8, 32], strides = [1, 1]} : vector<8x128xf32> to vector<8x32xf32>
    %222 = vector.extract_strided_slice %219 {offsets = [0, 32], sizes = [8, 32], strides = [1, 1]} : vector<8x128xf32> to vector<8x32xf32>
    %223 = vector.extract_strided_slice %220 {offsets = [0, 64], sizes = [8, 32], strides = [1, 1]} : vector<8x128xf32> to vector<8x32xf32>
    %224 = vector.extract_strided_slice %219 {offsets = [0, 96], sizes = [8, 32], strides = [1, 1]} : vector<8x128xf32> to vector<8x32xf32>
    %225 = arith.mulf %222, %180 : vector<8x32xf32>
    %226 = arith.mulf %221, %223 : vector<8x32xf32>
    %227 = arith.addf %225, %226 : vector<8x32xf32>
    %228 = math.tanh %227 : vector<8x32xf32>
    %229 = arith.mulf %224, %228 : vector<8x32xf32>
    %230 = arith.negf %214 : vector<8x128xf32>
    %231 = math.exp %230 : vector<8x128xf32>
    %cst_65 = arith.constant 1.000000e+00 : f32
    %232 = vector.broadcast %cst_65 : f32 to vector<8x128xf32>
    %233 = arith.addf %232, %231 : vector<8x128xf32>
    %234 = arith.divf %232, %233 : vector<8x128xf32>
    %235 = math.tanh %214 : vector<8x128xf32>
    %236 = vector.extract_strided_slice %234 {offsets = [0, 0], sizes = [8, 32], strides = [1, 1]} : vector<8x128xf32> to vector<8x32xf32>
    %237 = vector.extract_strided_slice %234 {offsets = [0, 32], sizes = [8, 32], strides = [1, 1]} : vector<8x128xf32> to vector<8x32xf32>
    %238 = vector.extract_strided_slice %235 {offsets = [0, 64], sizes = [8, 32], strides = [1, 1]} : vector<8x128xf32> to vector<8x32xf32>
    %239 = vector.extract_strided_slice %234 {offsets = [0, 96], sizes = [8, 32], strides = [1, 1]} : vector<8x128xf32> to vector<8x32xf32>
    %240 = arith.mulf %237, %195 : vector<8x32xf32>
    %241 = arith.mulf %236, %238 : vector<8x32xf32>
    %242 = arith.addf %240, %241 : vector<8x32xf32>
    %243 = math.tanh %242 : vector<8x32xf32>
    %244 = arith.mulf %239, %243 : vector<8x32xf32>
    %245 = arith.index_cast %203 : i32 to index
    %c0_66 = arith.constant 0 : index
    %246 = vector.load %arg10[%245, %c0_66] : memref<64x32xf32, #tpu.memory_space<vmem>>, vector<8x32xf32>
    tpu.vector_store %arg10[%245, %c0_66], %229 {strides = array<i32>} : memref<64x32xf32, #tpu.memory_space<vmem>>, vector<8x32xf32>,
    %247 = arith.index_cast %206 : i32 to index
    %c0_67 = arith.constant 0 : index
    %248 = vector.load %arg11[%247, %c0_67] : memref<64x32xf32, #tpu.memory_space<vmem>>, vector<8x32xf32>
    tpu.vector_store %arg11[%247, %c0_67], %244 {strides = array<i32>} : memref<64x32xf32, #tpu.memory_space<vmem>>, vector<8x32xf32>,
    %c5_i32 = arith.constant 5 : i32
    %c8_i32_68 = arith.constant 8 : i32
    %249 = arith.muli %c5_i32, %c8_i32_68 : i32
    %250 = tpu.assume_multiple %249, 8 : i32
    %c7_i32_69 = arith.constant 7 : i32
    %251 = arith.subi %c7_i32_69, %c5_i32 : i32
    %c8_i32_70 = arith.constant 8 : i32
    %252 = arith.muli %251, %c8_i32_70 : i32
    %253 = tpu.assume_multiple %252, 8 : i32
    %254 = arith.index_cast %250 : i32 to index
    %c0_71 = arith.constant 0 : index
    %255 = vector.load %arg8[%254, %c0_71] : memref<64x128xf32, #tpu.memory_space<vmem>>, vector<8x128xf32>
    %cst_72 = arith.constant dense<0.000000e+00> : vector<8x128xf32>
    %256 = tpu.matmul %229, %10, %cst_72 {dimension_numbers = #tpu.dot_dimension_numbers<[1], [0], [0], [1], [0, 0, 1, 1], [], []>} : vector<8x32xf32>, vector<32x128xf32>, vector<8x128xf32> -> vector<8x128xf32>
    %257 = arith.addf %255, %256 : vector<8x128xf32>
    %258 = arith.index_cast %253 : i32 to index
    %c0_73 = arith.constant 0 : index
    %259 = vector.load %arg9[%258, %c0_73] : memref<64x128xf32, #tpu.memory_space<vmem>>, vector<8x128xf32>
    %cst_74 = arith.constant dense<0.000000e+00> : vector<8x128xf32>
    %260 = tpu.matmul %244, %11, %cst_74 {dimension_numbers = #tpu.dot_dimension_numbers<[1], [0], [0], [1], [0, 0, 1, 1], [], []>} : vector<8x32xf32>, vector<32x128xf32>, vector<8x128xf32> -> vector<8x128xf32>
    %261 = arith.addf %259, %260 : vector<8x128xf32>
    %262 = arith.negf %257 : vector<8x128xf32>
    %263 = math.exp %262 : vector<8x128xf32>
    %cst_75 = arith.constant 1.000000e+00 : f32
    %264 = vector.broadcast %cst_75 : f32 to vector<8x128xf32>
    %265 = arith.addf %264, %263 : vector<8x128xf32>
    %266 = arith.divf %264, %265 : vector<8x128xf32>
    %267 = math.tanh %257 : vector<8x128xf32>
    %268 = vector.extract_strided_slice %266 {offsets = [0, 0], sizes = [8, 32], strides = [1, 1]} : vector<8x128xf32> to vector<8x32xf32>
    %269 = vector.extract_strided_slice %266 {offsets = [0, 32], sizes = [8, 32], strides = [1, 1]} : vector<8x128xf32> to vector<8x32xf32>
    %270 = vector.extract_strided_slice %267 {offsets = [0, 64], sizes = [8, 32], strides = [1, 1]} : vector<8x128xf32> to vector<8x32xf32>
    %271 = vector.extract_strided_slice %266 {offsets = [0, 96], sizes = [8, 32], strides = [1, 1]} : vector<8x128xf32> to vector<8x32xf32>
    %272 = arith.mulf %269, %227 : vector<8x32xf32>
    %273 = arith.mulf %268, %270 : vector<8x32xf32>
    %274 = arith.addf %272, %273 : vector<8x32xf32>
    %275 = math.tanh %274 : vector<8x32xf32>
    %276 = arith.mulf %271, %275 : vector<8x32xf32>
    %277 = arith.negf %261 : vector<8x128xf32>
    %278 = math.exp %277 : vector<8x128xf32>
    %cst_76 = arith.constant 1.000000e+00 : f32
    %279 = vector.broadcast %cst_76 : f32 to vector<8x128xf32>
    %280 = arith.addf %279, %278 : vector<8x128xf32>
    %281 = arith.divf %279, %280 : vector<8x128xf32>
    %282 = math.tanh %261 : vector<8x128xf32>
    %283 = vector.extract_strided_slice %281 {offsets = [0, 0], sizes = [8, 32], strides = [1, 1]} : vector<8x128xf32> to vector<8x32xf32>
    %284 = vector.extract_strided_slice %281 {offsets = [0, 32], sizes = [8, 32], strides = [1, 1]} : vector<8x128xf32> to vector<8x32xf32>
    %285 = vector.extract_strided_slice %282 {offsets = [0, 64], sizes = [8, 32], strides = [1, 1]} : vector<8x128xf32> to vector<8x32xf32>
    %286 = vector.extract_strided_slice %281 {offsets = [0, 96], sizes = [8, 32], strides = [1, 1]} : vector<8x128xf32> to vector<8x32xf32>
    %287 = arith.mulf %284, %242 : vector<8x32xf32>
    %288 = arith.mulf %283, %285 : vector<8x32xf32>
    %289 = arith.addf %287, %288 : vector<8x32xf32>
    %290 = math.tanh %289 : vector<8x32xf32>
    %291 = arith.mulf %286, %290 : vector<8x32xf32>
    %292 = arith.index_cast %250 : i32 to index
    %c0_77 = arith.constant 0 : index
    %293 = vector.load %arg10[%292, %c0_77] : memref<64x32xf32, #tpu.memory_space<vmem>>, vector<8x32xf32>
    tpu.vector_store %arg10[%292, %c0_77], %276 {strides = array<i32>} : memref<64x32xf32, #tpu.memory_space<vmem>>, vector<8x32xf32>,
    %294 = arith.index_cast %253 : i32 to index
    %c0_78 = arith.constant 0 : index
    %295 = vector.load %arg11[%294, %c0_78] : memref<64x32xf32, #tpu.memory_space<vmem>>, vector<8x32xf32>
    tpu.vector_store %arg11[%294, %c0_78], %291 {strides = array<i32>} : memref<64x32xf32, #tpu.memory_space<vmem>>, vector<8x32xf32>,
    %c6_i32 = arith.constant 6 : i32
    %c8_i32_79 = arith.constant 8 : i32
    %296 = arith.muli %c6_i32, %c8_i32_79 : i32
    %297 = tpu.assume_multiple %296, 8 : i32
    %c7_i32_80 = arith.constant 7 : i32
    %298 = arith.subi %c7_i32_80, %c6_i32 : i32
    %c8_i32_81 = arith.constant 8 : i32
    %299 = arith.muli %298, %c8_i32_81 : i32
    %300 = tpu.assume_multiple %299, 8 : i32
    %301 = arith.index_cast %297 : i32 to index
    %c0_82 = arith.constant 0 : index
    %302 = vector.load %arg8[%301, %c0_82] : memref<64x128xf32, #tpu.memory_space<vmem>>, vector<8x128xf32>
    %cst_83 = arith.constant dense<0.000000e+00> : vector<8x128xf32>
    %303 = tpu.matmul %276, %10, %cst_83 {dimension_numbers = #tpu.dot_dimension_numbers<[1], [0], [0], [1], [0, 0, 1, 1], [], []>} : vector<8x32xf32>, vector<32x128xf32>, vector<8x128xf32> -> vector<8x128xf32>
    %304 = arith.addf %302, %303 : vector<8x128xf32>
    %305 = arith.index_cast %300 : i32 to index
    %c0_84 = arith.constant 0 : index
    %306 = vector.load %arg9[%305, %c0_84] : memref<64x128xf32, #tpu.memory_space<vmem>>, vector<8x128xf32>
    %cst_85 = arith.constant dense<0.000000e+00> : vector<8x128xf32>
    %307 = tpu.matmul %291, %11, %cst_85 {dimension_numbers = #tpu.dot_dimension_numbers<[1], [0], [0], [1], [0, 0, 1, 1], [], []>} : vector<8x32xf32>, vector<32x128xf32>, vector<8x128xf32> -> vector<8x128xf32>
    %308 = arith.addf %306, %307 : vector<8x128xf32>
    %309 = arith.negf %304 : vector<8x128xf32>
    %310 = math.exp %309 : vector<8x128xf32>
    %cst_86 = arith.constant 1.000000e+00 : f32
    %311 = vector.broadcast %cst_86 : f32 to vector<8x128xf32>
    %312 = arith.addf %311, %310 : vector<8x128xf32>
    %313 = arith.divf %311, %312 : vector<8x128xf32>
    %314 = math.tanh %304 : vector<8x128xf32>
    %315 = vector.extract_strided_slice %313 {offsets = [0, 0], sizes = [8, 32], strides = [1, 1]} : vector<8x128xf32> to vector<8x32xf32>
    %316 = vector.extract_strided_slice %313 {offsets = [0, 32], sizes = [8, 32], strides = [1, 1]} : vector<8x128xf32> to vector<8x32xf32>
    %317 = vector.extract_strided_slice %314 {offsets = [0, 64], sizes = [8, 32], strides = [1, 1]} : vector<8x128xf32> to vector<8x32xf32>
    %318 = vector.extract_strided_slice %313 {offsets = [0, 96], sizes = [8, 32], strides = [1, 1]} : vector<8x128xf32> to vector<8x32xf32>
    %319 = arith.mulf %316, %274 : vector<8x32xf32>
    %320 = arith.mulf %315, %317 : vector<8x32xf32>
    %321 = arith.addf %319, %320 : vector<8x32xf32>
    %322 = math.tanh %321 : vector<8x32xf32>
    %323 = arith.mulf %318, %322 : vector<8x32xf32>
    %324 = arith.negf %308 : vector<8x128xf32>
    %325 = math.exp %324 : vector<8x128xf32>
    %cst_87 = arith.constant 1.000000e+00 : f32
    %326 = vector.broadcast %cst_87 : f32 to vector<8x128xf32>
    %327 = arith.addf %326, %325 : vector<8x128xf32>
    %328 = arith.divf %326, %327 : vector<8x128xf32>
    %329 = math.tanh %308 : vector<8x128xf32>
    %330 = vector.extract_strided_slice %328 {offsets = [0, 0], sizes = [8, 32], strides = [1, 1]} : vector<8x128xf32> to vector<8x32xf32>
    %331 = vector.extract_strided_slice %328 {offsets = [0, 32], sizes = [8, 32], strides = [1, 1]} : vector<8x128xf32> to vector<8x32xf32>
    %332 = vector.extract_strided_slice %329 {offsets = [0, 64], sizes = [8, 32], strides = [1, 1]} : vector<8x128xf32> to vector<8x32xf32>
    %333 = vector.extract_strided_slice %328 {offsets = [0, 96], sizes = [8, 32], strides = [1, 1]} : vector<8x128xf32> to vector<8x32xf32>
    %334 = arith.mulf %331, %289 : vector<8x32xf32>
    %335 = arith.mulf %330, %332 : vector<8x32xf32>
    %336 = arith.addf %334, %335 : vector<8x32xf32>
    %337 = math.tanh %336 : vector<8x32xf32>
    %338 = arith.mulf %333, %337 : vector<8x32xf32>
    %339 = arith.index_cast %297 : i32 to index
    %c0_88 = arith.constant 0 : index
    %340 = vector.load %arg10[%339, %c0_88] : memref<64x32xf32, #tpu.memory_space<vmem>>, vector<8x32xf32>
    tpu.vector_store %arg10[%339, %c0_88], %323 {strides = array<i32>} : memref<64x32xf32, #tpu.memory_space<vmem>>, vector<8x32xf32>,
    %341 = arith.index_cast %300 : i32 to index
    %c0_89 = arith.constant 0 : index
    %342 = vector.load %arg11[%341, %c0_89] : memref<64x32xf32, #tpu.memory_space<vmem>>, vector<8x32xf32>
    tpu.vector_store %arg11[%341, %c0_89], %338 {strides = array<i32>} : memref<64x32xf32, #tpu.memory_space<vmem>>, vector<8x32xf32>,
    %c7_i32_90 = arith.constant 7 : i32
    %c8_i32_91 = arith.constant 8 : i32
    %343 = arith.muli %c7_i32_90, %c8_i32_91 : i32
    %344 = tpu.assume_multiple %343, 8 : i32
    %c7_i32_92 = arith.constant 7 : i32
    %345 = arith.subi %c7_i32_92, %c7_i32_90 : i32
    %c8_i32_93 = arith.constant 8 : i32
    %346 = arith.muli %345, %c8_i32_93 : i32
    %347 = tpu.assume_multiple %346, 8 : i32
    %348 = arith.index_cast %344 : i32 to index
    %c0_94 = arith.constant 0 : index
    %349 = vector.load %arg8[%348, %c0_94] : memref<64x128xf32, #tpu.memory_space<vmem>>, vector<8x128xf32>
    %cst_95 = arith.constant dense<0.000000e+00> : vector<8x128xf32>
    %350 = tpu.matmul %323, %10, %cst_95 {dimension_numbers = #tpu.dot_dimension_numbers<[1], [0], [0], [1], [0, 0, 1, 1], [], []>} : vector<8x32xf32>, vector<32x128xf32>, vector<8x128xf32> -> vector<8x128xf32>
    %351 = arith.addf %349, %350 : vector<8x128xf32>
    %352 = arith.index_cast %347 : i32 to index
    %c0_96 = arith.constant 0 : index
    %353 = vector.load %arg9[%352, %c0_96] : memref<64x128xf32, #tpu.memory_space<vmem>>, vector<8x128xf32>
    %cst_97 = arith.constant dense<0.000000e+00> : vector<8x128xf32>
    %354 = tpu.matmul %338, %11, %cst_97 {dimension_numbers = #tpu.dot_dimension_numbers<[1], [0], [0], [1], [0, 0, 1, 1], [], []>} : vector<8x32xf32>, vector<32x128xf32>, vector<8x128xf32> -> vector<8x128xf32>
    %355 = arith.addf %353, %354 : vector<8x128xf32>
    %356 = arith.negf %351 : vector<8x128xf32>
    %357 = math.exp %356 : vector<8x128xf32>
    %cst_98 = arith.constant 1.000000e+00 : f32
    %358 = vector.broadcast %cst_98 : f32 to vector<8x128xf32>
    %359 = arith.addf %358, %357 : vector<8x128xf32>
    %360 = arith.divf %358, %359 : vector<8x128xf32>
    %361 = math.tanh %351 : vector<8x128xf32>
    %362 = vector.extract_strided_slice %360 {offsets = [0, 0], sizes = [8, 32], strides = [1, 1]} : vector<8x128xf32> to vector<8x32xf32>
    %363 = vector.extract_strided_slice %360 {offsets = [0, 32], sizes = [8, 32], strides = [1, 1]} : vector<8x128xf32> to vector<8x32xf32>
    %364 = vector.extract_strided_slice %361 {offsets = [0, 64], sizes = [8, 32], strides = [1, 1]} : vector<8x128xf32> to vector<8x32xf32>
    %365 = vector.extract_strided_slice %360 {offsets = [0, 96], sizes = [8, 32], strides = [1, 1]} : vector<8x128xf32> to vector<8x32xf32>
    %366 = arith.mulf %363, %321 : vector<8x32xf32>
    %367 = arith.mulf %362, %364 : vector<8x32xf32>
    %368 = arith.addf %366, %367 : vector<8x32xf32>
    %369 = math.tanh %368 : vector<8x32xf32>
    %370 = arith.mulf %365, %369 : vector<8x32xf32>
    %371 = arith.negf %355 : vector<8x128xf32>
    %372 = math.exp %371 : vector<8x128xf32>
    %cst_99 = arith.constant 1.000000e+00 : f32
    %373 = vector.broadcast %cst_99 : f32 to vector<8x128xf32>
    %374 = arith.addf %373, %372 : vector<8x128xf32>
    %375 = arith.divf %373, %374 : vector<8x128xf32>
    %376 = math.tanh %355 : vector<8x128xf32>
    %377 = vector.extract_strided_slice %375 {offsets = [0, 0], sizes = [8, 32], strides = [1, 1]} : vector<8x128xf32> to vector<8x32xf32>
    %378 = vector.extract_strided_slice %375 {offsets = [0, 32], sizes = [8, 32], strides = [1, 1]} : vector<8x128xf32> to vector<8x32xf32>
    %379 = vector.extract_strided_slice %376 {offsets = [0, 64], sizes = [8, 32], strides = [1, 1]} : vector<8x128xf32> to vector<8x32xf32>
    %380 = vector.extract_strided_slice %375 {offsets = [0, 96], sizes = [8, 32], strides = [1, 1]} : vector<8x128xf32> to vector<8x32xf32>
    %381 = arith.mulf %378, %336 : vector<8x32xf32>
    %382 = arith.mulf %377, %379 : vector<8x32xf32>
    %383 = arith.addf %381, %382 : vector<8x32xf32>
    %384 = math.tanh %383 : vector<8x32xf32>
    %385 = arith.mulf %380, %384 : vector<8x32xf32>
    %386 = arith.index_cast %344 : i32 to index
    %c0_100 = arith.constant 0 : index
    %387 = vector.load %arg10[%386, %c0_100] : memref<64x32xf32, #tpu.memory_space<vmem>>, vector<8x32xf32>
    tpu.vector_store %arg10[%386, %c0_100], %370 {strides = array<i32>} : memref<64x32xf32, #tpu.memory_space<vmem>>, vector<8x32xf32>,
    %388 = arith.index_cast %347 : i32 to index
    %c0_101 = arith.constant 0 : index
    %389 = vector.load %arg11[%388, %c0_101] : memref<64x32xf32, #tpu.memory_space<vmem>>, vector<8x32xf32>
    tpu.vector_store %arg11[%388, %c0_101], %385 {strides = array<i32>} : memref<64x32xf32, #tpu.memory_space<vmem>>, vector<8x32xf32>,
    %c8_i32_102 = arith.constant 8 : i32
    %c0_103 = arith.constant 0 : index
    %c0_104 = arith.constant 0 : index
    %390 = vector.load %arg10[%c0_103, %c0_104] : memref<64x32xf32, #tpu.memory_space<vmem>>, vector<64x32xf32>
    %c0_105 = arith.constant 0 : index
    %c0_106 = arith.constant 0 : index
    %391 = vector.load %arg11[%c0_105, %c0_106] : memref<64x32xf32, #tpu.memory_space<vmem>>, vector<64x32xf32>
    %392 = arith.addf %390, %391 : vector<64x32xf32>
    %c0_107 = arith.constant 0 : index
    %c0_108 = arith.constant 0 : index
    %393 = vector.load %arg5[%c0_107, %c0_108] : memref<64x32xf32, #tpu.memory_space<vmem>>, vector<64x32xf32>
    tpu.vector_store %arg5[%c0_107, %c0_108], %392 {strides = array<i32>} : memref<64x32xf32, #tpu.memory_space<vmem>>, vector<64x32xf32>,
    %c0_109 = arith.constant 0 : index
    %c0_110 = arith.constant 0 : index
    %c0_111 = arith.constant 0 : index
    %394 = vector.load %arg6[%c0_109, %c0_110, %c0_111] : memref<2x8x32xf32, #tpu.memory_space<vmem>>, vector<1x8x32xf32>
    %395 = vector.shape_cast %394 : vector<1x8x32xf32> to vector<8x32xf32>
    %396 = vector.shape_cast %370 : vector<8x32xf32> to vector<1x8x32xf32>
    tpu.vector_store %arg6[%c0_109, %c0_110, %c0_111], %396 {strides = array<i32>} : memref<2x8x32xf32, #tpu.memory_space<vmem>>, vector<1x8x32xf32>,
    %c1 = arith.constant 1 : index
    %c0_112 = arith.constant 0 : index
    %c0_113 = arith.constant 0 : index
    %397 = vector.load %arg6[%c1, %c0_112, %c0_113] : memref<2x8x32xf32, #tpu.memory_space<vmem>>, vector<1x8x32xf32>
    %398 = vector.shape_cast %397 : vector<1x8x32xf32> to vector<8x32xf32>
    %399 = vector.shape_cast %385 : vector<8x32xf32> to vector<1x8x32xf32>
    tpu.vector_store %arg6[%c1, %c0_112, %c0_113], %399 {strides = array<i32>} : memref<2x8x32xf32, #tpu.memory_space<vmem>>, vector<1x8x32xf32>,
    %c0_114 = arith.constant 0 : index
    %c0_115 = arith.constant 0 : index
    %c0_116 = arith.constant 0 : index
    %400 = vector.load %arg7[%c0_114, %c0_115, %c0_116] : memref<2x8x32xf32, #tpu.memory_space<vmem>>, vector<1x8x32xf32>
    %401 = vector.shape_cast %400 : vector<1x8x32xf32> to vector<8x32xf32>
    %402 = vector.shape_cast %368 : vector<8x32xf32> to vector<1x8x32xf32>
    tpu.vector_store %arg7[%c0_114, %c0_115, %c0_116], %402 {strides = array<i32>} : memref<2x8x32xf32, #tpu.memory_space<vmem>>, vector<1x8x32xf32>,
    %c1_117 = arith.constant 1 : index
    %c0_118 = arith.constant 0 : index
    %c0_119 = arith.constant 0 : index
    %403 = vector.load %arg7[%c1_117, %c0_118, %c0_119] : memref<2x8x32xf32, #tpu.memory_space<vmem>>, vector<1x8x32xf32>
    %404 = vector.shape_cast %403 : vector<1x8x32xf32> to vector<8x32xf32>
    %405 = vector.shape_cast %383 : vector<8x32xf32> to vector<1x8x32xf32>
    tpu.vector_store %arg7[%c1_117, %c0_118, %c0_119], %405 {strides = array<i32>} : memref<2x8x32xf32, #tpu.memory_space<vmem>>, vector<1x8x32xf32>,
    return
  }
}

</mosaic_0001>

<bundles_post_ra>
// kernel: tpu_custom_call.1
= control target key start
LH: loop header
LB: loop body
LE: loop exit
PB: predicated region body
PF: predicated region fallthrough
CT: control target
= control target key end

     0   :  { %13 = vsyncpa [#allocation7], 0  ;;  %s3042_s0 = inlined_call_operand.vmem [shape: f32[64,32], index: 0, kind: input, shape index: {}]   ;;  %s3043_s1 = inlined_call_operand.vmem [shape: f32[32,256], index: 1, kind: input, shape index: {}]   ;;  %s3044_s2 = inlined_call_operand.vmem [shape: f32[1,256], index: 2, kind: input, shape index: {}]   ;;  %s3045_s3 = inlined_call_operand.vmem [shape: f32[32,128], index: 3, kind: input, shape index: {}]   ;;  %s3046_s4 = inlined_call_operand.hbm [shape: f32[32,128], index: 4, kind: input, shape index: {}]   ;;  %s3047_s5 = inlined_call_operand.vmem [shape: f32[64,32], index: 5, kind: output, shape index: {0}]   ;;  %s3048_s6 = inlined_call_operand.hbm [shape: f32[2,8,32], index: 6, kind: output, shape index: {1}]   ;;  %s3049_s7 = inlined_call_operand.hbm [shape: f32[2,8,32], index: 7, kind: output, shape index: {2}]  }
   0x1   :  { %14 = vsyncpa [#allocation8], 0 }
   0x2   :  { %15 = vsyncpa [#allocation11], 0  ;;  %s2493_s24 = smov [#allocation6]  }
   0x3   :  { %s29_s25 = sshll.u32 %s2493_s24, 4  ;;  %s30_s25 = int_to_ptr.vmem [resolvable:$true] %s29_s25 }
   0x4   :  { %s2435_s26 = scalar_lea.vmem %s30_s25, 512  ;;  %p2440_p1 = scmp.lt.s32.totalorder %s30_s25, %s30_s25 }
   0x5   :  { %p2436_p0 = scmp.ne.s32.totalorder %s30_s25, %s2435_s26  ;;  %p2441_p2 = scmp.lt.s32.totalorder %s2435_s26, %s2435_s26 }
   0x7   :  { %p2442_p3 = por %p2441_p2, %p2440_p1 }
   0x9   :  { %p2443_p4 = pnand %p2442_p3, %p2436_p0 }
   0xb   :  { %2446 = shalt.err (!%p2443_p4)
}
   0xc   :  { %s2494_s27 = smov 128   ;;  %s2495_s28 = smov 8  }
   0xd   :  { %35 = dma.hbm_to_vmem [thread:$0]  %s3046_s4, 512, %s30_s25, [#allocation7], %s2494_s27, %s2494_s27, %s2495_s28  }
   0xe   :  { %2487 = dma.done.wait [#allocation7], 512  }
   0xf   :  { %2488 = vsyncadd [#allocation7], 4294966784  ;;  %v2496_v0 = vmov 0.0   ;;  %vm2497_vm0 = vmmov 0   ;;  %v54_v1 = vld [vmem:[%s3043_s1 + $0x38] sm:$0xff]  ;;  %v53_v2 = vld [vmem:[%s3043_s1 + $0x30] sm:$0xff]  ;;  %v57_v25 = vlaneseq }
  0x10   :  { %2105 = vmatprep.subr.mxu1 %v2496_v0  ;;  %156 = vmatprep.mubr.f32.mxu0 %v2496_v0  ;;  %v52_v3 = vld [vmem:[%s3043_s1 + $0x28] sm:$0xff]  ;;  %v51_v4 = vld [vmem:[%s3043_s1 + $0x20] sm:$0xff]  ;;  %v2568_v5 = vld [vmem:[%s3045_s3 + $0x18] sm:$0xff]  ;;  %vm67_vm1 = vcmask 261120   ;;  %s2500_s22 = smov 96   ;;  %s2501_s25 = smov [#allocation9]  }
  0x11   :  { %2113 = vmatprep.mubr.msk.f32.mxu1 %vm2497_vm0, %v2496_v0  ;;  %116 = vmatprep.subr.mxu0 %v54_v1  ;;  %v50_v6 = vld [vmem:[%s3043_s1 + $0x18] sm:$0xff]  ;;  %v2577_v7 = vld [vmem:[%s3045_s3 + $0x10] sm:$0xff]  ;;  %v2586_v9 = vld [vmem:[%s3045_s3 + $0x8] sm:$0xff]  ;;  %v58_v26 = vshrl.u32 %v57_v25, 7 }
  0x12   :  { %117 = vmatpush1.msra.mxu0 %v53_v2  ;;  %2106 = vmatpush3.msra.mxu1 %v2568_v5  ;;  %v49_v8 = vld [vmem:[%s3043_s1 + $0x10] sm:$0xff]  ;;  %v48_v10 = vld [vmem:[%s3043_s1 + $0x8] sm:$0xff]  ;;  %v47_v11 = vld [vmem:[%s3043_s1] sm:$0xff] }
  0x13   :  { %118 = vmatprep.subr.mxu0 %v52_v3  ;;  %2107 = vmatprep.subr.mxu1 %v2496_v0  ;;  %v2599_v12 = vld [vmem:[%s3045_s3] sm:$0xff]  ;;  %v2607_v14 = vld [vmem:[#allocation6 + $0x18] sm:$0xff]  ;;  %v40_v15 = vld [vmem:[%s3042_s0 + $0x8] sm:$0xff]  ;;  %v59_v27 = vsub.s32 0, %v58_v26  ;;  %v63_v29 = vsub.s32 1, %v58_v26 }
  0x14   :  { %119 = vmatpush1.msra.mxu0 %v51_v4  ;;  %2108 = vmatpush3.msra.mxu1 %v2577_v7  ;;  %v39_v13 = vld [vmem:[%s3042_s0] sm:$0xff]  ;;  %v2616_v16 = vld [vmem:[#allocation6 + $0x10] sm:$0xff]  ;;  %v2622_v17 = vld [vmem:[#allocation6 + $0x8] sm:$0xff] }
  0x15   :  { %120 = vmatprep.subr.mxu0 %v50_v6  ;;  %2109 = vmatprep.subr.mxu1 %v2496_v0  ;;  %v41_v18 = vld [vmem:[%s3042_s0 + $0x10] sm:$0xff]  ;;  %v2632_v19 = vld [vmem:[#allocation6] sm:$0xff]  ;;  %v42_v20 = vld [vmem:[%s3042_s0 + $0x18] sm:$0xff] }
  0x16   :  { %121 = vmatpush1.msra.mxu0 %v49_v8  ;;  %2110 = vmatpush3.msra.mxu1 %v2586_v9  ;;  %v43_v21 = vld [vmem:[%s3042_s0 + $0x20] sm:$0xff]  ;;  %v44_v22 = vld [vmem:[%s3042_s0 + $0x28] sm:$0xff]  ;;  %v45_v23 = vld [vmem:[%s3042_s0 + $0x30] sm:$0xff] }
  0x17   :  { %122 = vmatprep.subr.mxu0 %v48_v10  ;;  %2111 = vmatprep.subr.mxu1 %v2496_v0  ;;  %v46_v24 = vld [vmem:[%s3042_s0 + $0x38] sm:$0xff]  ;;  %v55_v28 = vld [vmem:[%s3044_s2] sm:$0x3]  ;;  %s2498_s0 = smov 64   ;;  %s2499_s2 = smov 32  }
  0x18   :  { %123 = vmatpush1.msra.mxu0 %v47_v11  ;;  %2112 = vmatpush3.msra.mxu1 %v2599_v12  ;;  %v60_v30 = vrot.slane %v55_v28, %v59_v27  ;;  %v64_v31 = vrot.slane %v55_v28, %v63_v29 }
  0x19   :  { %1987 = vmatmul.mubr.msk.f32.vlgmr.msra.gmra.mxu0 %vm67_vm1, %v39_v13  ;;  %2114 = vmatmul.mubr.f32.vlgmr.msra.gmra.mxu1 %v2496_v0 }
  0x1a   :  { %162 = vmatprep.mubr.f32.mxu0 %v2496_v0  ;;  %2116 = vmatprep.subr.mxu1 %v2496_v0 }
  0x1b   :  { %2117 = vmatpush3.msra.mxu1 %v2607_v14  ;;  %2124 = vmatprep.mubr.msk.f32.mxu1 %vm2497_vm0, %v2496_v0 }
  0x1c   :  { %2118 = vmatprep.subr.mxu1 %v2496_v0  ;;  %2149 = vmatprep.subr.mxu0 %v2496_v0 }
  0x1d   :  { %1988 = vmatmul.mubr.msk.f32.gmra.mxu0 %vm67_vm1, %v40_v15  ;;  %2119 = vmatpush3.msra.mxu1 %v2616_v16 }
  0x1e   :  { %168 = vmatprep.mubr.f32.mxu0 %v2496_v0  ;;  %2120 = vmatprep.subr.mxu1 %v2496_v0 }
  0x1f   :  { %2121 = vmatpush3.msra.mxu1 %v2622_v17  ;;  %2150 = vmatpush3.msra.mxu0 %v2568_v5 }
  0x20   :  { %2122 = vmatprep.subr.mxu1 %v2496_v0  ;;  %2151 = vmatprep.subr.mxu0 %v2496_v0 }
  0x21   :  { %1989 = vmatmul.mubr.msk.f32.gmra.mxu0 %vm67_vm1, %v41_v18  ;;  %2123 = vmatpush3.msra.mxu1 %v2632_v19 }
  0x22   :  { %174 = vmatprep.mubr.f32.mxu0 %v2496_v0  ;;  %2125 = vmatmul.mubr.f32.vlgmr.msra.gmra.mxu1 %v2496_v0 }
  0x23   :  { %2127 = vmatprep.subr.mxu1 %v2496_v0  ;;  %2135 = vmatprep.mubr.msk.f32.mxu1 %vm2497_vm0, %v2496_v0 }
  0x24   :  { %2128 = vmatpush3.msra.mxu1 %v2568_v5  ;;  %2152 = vmatpush3.msra.mxu0 %v2577_v7 }
  0x25   :  { %1990 = vmatmul.mubr.msk.f32.gmra.mxu0 %vm67_vm1, %v42_v20  ;;  %2129 = vmatprep.subr.mxu1 %v2496_v0 }
  0x26   :  { %180 = vmatprep.mubr.f32.mxu0 %v2496_v0  ;;  %2130 = vmatpush3.msra.mxu1 %v2577_v7 }
  0x27   :  { %2131 = vmatprep.subr.mxu1 %v2496_v0  ;;  %2153 = vmatprep.subr.mxu0 %v2496_v0 }
  0x28   :  { %2132 = vmatpush3.msra.mxu1 %v2586_v9  ;;  %2154 = vmatpush3.msra.mxu0 %v2586_v9 }
  0x29   :  { %1991 = vmatmul.mubr.msk.f32.gmra.mxu0 %vm67_vm1, %v43_v21  ;;  %2133 = vmatprep.subr.mxu1 %v2496_v0 }
  0x2a   :  { %186 = vmatprep.mubr.f32.mxu0 %v2496_v0  ;;  %2134 = vmatpush3.msra.mxu1 %v2599_v12 }
  0x2b   :  { %2138 = vmatprep.subr.mxu1 %v2496_v0  ;;  %2155 = vmatprep.subr.mxu0 %v2496_v0 }
  0x2c   :  { %2156 = vmatpush3.msra.mxu0 %v2599_v12 }
  0x2d   :  { %1992 = vmatmul.mubr.msk.f32.gmra.mxu0 %vm67_vm1, %v44_v22  ;;  %2171 = vmatprep.subr.mxu0 %v2496_v0 }
  0x2e   :  { %192 = vmatprep.mubr.f32.mxu0 %v2496_v0 }
  0x31   :  { %1993 = vmatmul.mubr.msk.f32.gmra.mxu0 %vm67_vm1, %v45_v23 }
  0x32   :  { %198 = vmatprep.mubr.f32.mxu0 %v2496_v0 }
  0x35   :  { %1994 = vmatmul.mubr.msk.f32.gmra.mxu0 %vm67_vm1, %v46_v24 }
  0x36   :  { %2157 = vmatprep.mubr.msk.f32.mxu0 %vm2497_vm0, %v2496_v0 }
  0xd9   :  { %v158_v32 = vpop.f32.mrf.mxu0  ;;  %v299_v33 = vpop.f32.mrf.mxu1 }
  0xda   :  { %v159_v34 = vadd.f32 %v158_v32, %v60_v30 }
  0xdb   :  { %v160_v35 = vpop.f32.mrf.mxu0  ;;  %v2115_v36 = vpop.f32.mrf.mxu1 }
  0xdc   :  { %v2688_v37 = vadd.f32 %v160_v35, %v64_v31  ;;  %v303_v38 = vadd.f32 %v299_v33, %v159_v34 }
  0xdd   :  { %v164_v39 = vpop.f32.mrf.mxu0 }
  0xde   :  { %2291 = vtanh.f32 %v303_v38  ;;  %v2690_v40 = vadd.f32 %v164_v39, %v60_v30  ;;  %v1995_v13 = vmul.f32 -1.442695, %v303_v38 }
  0xdf   :  { %v166_v41 = vpop.f32.mrf.mxu0 }
  0xe0   :  { %v2692_v42 = vadd.f32 %v166_v41, %v64_v31 }
  0xe1   :  { %v170_v43 = vpop.f32.mrf.mxu0 }
  0xe2   :  { %v2694_v44 = vadd.f32 %v170_v43, %v60_v30  ;;  %v372_v45 = vpop.f32.mrf.mxu1 }
  0xe3   :  { %v172_v46 = vpop.f32.mrf.mxu0 }
  0xe4   :  { %v2696_v47 = vadd.f32 %v172_v46, %v64_v31  ;;  %v2126_v48 = vpop.f32.mrf.mxu1 }
  0xe5   :  { %v176_v49 = vpop.f32.mrf.mxu0 }
  0xe6   :  { %v2698_v50 = vadd.f32 %v176_v49, %v60_v30 }
  0xe7   :  { %v178_v51 = vpop.f32.mrf.mxu0 }
  0xe8   :  { %v2700_v52 = vadd.f32 %v178_v51, %v64_v31 }
  0xe9   :  { %v182_v53 = vpop.f32.mrf.mxu0 }
  0xea   :  { %v2702_v54 = vadd.f32 %v182_v53, %v60_v30 }
  0xeb   :  { %v2292_v55 = vpop.eup %2291  ;;  %v184_v56 = vpop.f32.mrf.mxu0 }
  0xec   :  { %v2704_v57 = vadd.f32 %v184_v56, %v64_v31  ;;  %386 = vrot.lane.b32.xlu0 %v2292_v55, %s2498_s0 }
  0xed   :  { %v188_v58 = vpop.f32.mrf.mxu0 }
  0xee   :  { %v2707_v59 = vadd.f32 %v188_v58, %v60_v30 }
  0xef   :  { %v190_v60 = vpop.f32.mrf.mxu0 }
  0xf0   :  { %v2709_v61 = vadd.f32 %v190_v60, %v64_v31 }
  0xf1   :  { %v194_v62 = vpop.f32.mrf.mxu0 }
  0xf2   :  { %v2711_v63 = vadd.f32 %v194_v62, %v60_v30 }
  0xf3   :  { %v196_v1 = vpop.f32.mrf.mxu0 }
  0xf4   :  { %v2713_v2 = vadd.f32 %v196_v1, %v64_v31 }
  0xf5   :  { %v200_v3 = vpop.f32.mrf.mxu0 }
  0xf6   :  { %v2715_v4 = vadd.f32 %v200_v3, %v60_v30 }
  0xf7   :  { %v202_v6 = vpop.f32.mrf.mxu0 }
  0xf8   :  { %v203_v8 = vadd.f32 %v202_v6, %v64_v31 }
  0xfa   :  { %v376_v10 = vadd.f32 %v372_v45, %v203_v8 }
  0xfc   :  { %2293 = vtanh.f32 %v376_v10  ;;  %v1996_v20 = vmul.f32 -1.442695, %v376_v10 }
  0xfd   :  { %2295 = vpow2.f32 %v1995_v13 }
 0x109   :  { %v2294_v11 = vpop.eup %2293 }
 0x10a   :  { %410 = vrot.lane.b32.xlu0 %v2294_v11, %s2498_s0  ;;  %v2296_v15 = vpop.eup %2295 }
 0x10b   :  { %v380_v18 = vadd.f32 1.0, %v2296_v15 }
 0x10d   :  { %2297 = vrcp.f32 %v380_v18 }
 0x10e   :  { %2299 = vpow2.f32 %v1996_v20 }
 0x11a   :  { %v2298_v21 = vpop.eup %2297 }
 0x11b   :  { %v2300_v24 = vpop.eup %2299  ;;  %v384_v29 = vmul.f32 0.0, %v2298_v21 }
 0x11c   :  { %v404_v25 = vadd.f32 1.0, %v2300_v24 }
 0x11e   :  { %2301 = vrcp.f32 %v404_v25 }
 0x12b   :  { %v2302_v26 = vpop.eup %2301 }
 0x12c   :  { %v408_v33 = vmul.f32 0.0, %v2302_v26 }
 0x15e   :  { %v387_v22 = vpop.permute.xlu0 %386 }
 0x15f   :  { %v389_v23 = vmul.f32 %v2298_v21, %v387_v22 }
 0x161   :  { %391 = vrot.lane.b32.xlu1 %v389_v23, %s2499_s2 }
 0x17c   :  { %v411_v27 = vpop.permute.xlu0 %410 }
 0x17d   :  { %v413_v28 = vmul.f32 %v2302_v26, %v411_v27 }
 0x17f   :  { %415 = vrot.lane.b32.xlu1 %v413_v28, %s2499_s2 }
 0x1d3   :  { %v392_v30 = vpop.permute.xlu1 %391 }
 0x1d4   :  { %v2720_v31 = vadd.f32 %v392_v30, %v384_v29 }
 0x1d6   :  { %2303 = vtanh.f32 %v2720_v31 }
 0x1e3   :  { %v2304_v32 = vpop.eup %2303 }
 0x1e4   :  { %397 = vrot.lane.b32.xlu0 %v2304_v32, %s2498_s0 }
 0x1f1   :  { %v416_v34 = vpop.permute.xlu1 %415 }
 0x1f2   :  { %v2724_v35 = vadd.f32 %v416_v34, %v408_v33 }
 0x1f4   :  { %2305 = vtanh.f32 %v2724_v35 }
 0x201   :  { %v2306_v36 = vpop.eup %2305 }
 0x202   :  { %421 = vrot.lane.b32.xlu1 %v2306_v36, %s2498_s0 }
 0x256   :  { %v398_v38 = vpop.permute.xlu0 %397 }
 0x257   :  { %v400_v39 = vmul.f32 %v2298_v21, %v398_v38 }
 0x259   :  { %426 = vrot.lane.b32.xlu0 %v400_v39, %s2499_s2 }
 0x274   :  { %v422_v41 = vpop.permute.xlu1 %421 }
 0x275   :  { %v424_v43 = vmul.f32 %v2302_v26, %v422_v41 }
 0x277   :  { %431 = vrot.lane.b32.xlu1 %v424_v43, %s2499_s2 }
 0x2cb   :  { %v427_v45 = vpop.permute.xlu0 %426 }
 0x2cc   :  { %429 = vst.msk [vmem:[#allocation4] sm:$0xff] %vm67_vm1, %v427_v45  ;;  %2136 = vmatmul.mubr.msk.f32.vlgmr.msra.gmra.mxu1 %vm67_vm1, %v427_v45 }
 0x2cd   :  { %2139 = vmatpush3.msra.mxu1 %v2607_v14  ;;  %2146 = vmatprep.mubr.msk.f32.mxu1 %vm2497_vm0, %v2496_v0 }
 0x2ce   :  { %2140 = vmatprep.subr.mxu1 %v2496_v0 }
 0x2cf   :  { %2141 = vmatpush3.msra.mxu1 %v2616_v16 }
 0x2d0   :  { %2142 = vmatprep.subr.mxu1 %v2496_v0 }
 0x2d1   :  { %2143 = vmatpush3.msra.mxu1 %v2622_v17 }
 0x2d2   :  { %2144 = vmatprep.subr.mxu1 %v2496_v0 }
 0x2d3   :  { %2145 = vmatpush3.msra.mxu1 %v2632_v19 }
 0x2d4   :  { %2160 = vmatprep.subr.mxu1 %v2496_v0 }
 0x2e9   :  { %v432_v46 = vpop.permute.xlu1 %431 }
 0x2ea   :  { %435 = vst.msk [vmem:[#allocation5 + $0x38] sm:$0xff] %vm67_vm1, %v432_v46  ;;  %2147 = vmatmul.mubr.msk.f32.vlgmr.msra.gmra.mxu1 %vm67_vm1, %v432_v46 }
 0x2eb   :  { %2161 = vmatpush3.msra.mxu1 %v2607_v14  ;;  %2168 = vmatprep.mubr.msk.f32.mxu1 %vm2497_vm0, %v2496_v0 }
 0x2ec   :  { %2162 = vmatprep.subr.mxu1 %v2496_v0 }
 0x2ed   :  { %2163 = vmatpush3.msra.mxu1 %v2616_v16 }
 0x2ee   :  { %2164 = vmatprep.subr.mxu1 %v2496_v0 }
 0x2ef   :  { %2165 = vmatpush3.msra.mxu1 %v2622_v17 }
 0x2f0   :  { %2166 = vmatprep.subr.mxu1 %v2496_v0 }
 0x2f1   :  { %2167 = vmatpush3.msra.mxu1 %v2632_v19 }
 0x2f2   :  { %2182 = vmatprep.subr.mxu1 %v2496_v0 }
 0x38c   :  { %v506_v48 = vpop.f32.mrf.mxu1 }
 0x38d   :  { %v510_v49 = vadd.f32 %v506_v48, %v2690_v40 }
 0x38e   :  { %v2137_v51 = vpop.f32.mrf.mxu1 }
 0x38f   :  { %2307 = vtanh.f32 %v510_v49  ;;  %v1999_v62 = vmul.f32 -1.442695, %v510_v49 }
 0x39c   :  { %v2308_v53 = vpop.eup %2307 }
 0x39d   :  { %595 = vrot.lane.b32.xlu0 %v2308_v53, %s2498_s0 }
 0x3aa   :  { %v581_v55 = vpop.f32.mrf.mxu1 }
 0x3ab   :  { %v585_v56 = vadd.f32 %v581_v55, %v2713_v2 }
 0x3ac   :  { %v2148_v58 = vpop.f32.mrf.mxu1 }
 0x3ad   :  { %2309 = vtanh.f32 %v585_v56  ;;  %v2000_v6 = vmul.f32 -1.442695, %v585_v56 }
 0x3ae   :  { %2311 = vpow2.f32 %v1999_v62 }
 0x3ba   :  { %v2310_v60 = vpop.eup %2309 }
 0x3bb   :  { %619 = vrot.lane.b32.xlu1 %v2310_v60, %s2498_s0  ;;  %v2312_v1 = vpop.eup %2311 }
 0x3bc   :  { %v589_v3 = vadd.f32 1.0, %v2312_v1 }
 0x3be   :  { %2313 = vrcp.f32 %v589_v3 }
 0x3bf   :  { %2315 = vpow2.f32 %v2000_v6 }
 0x3cb   :  { %v2314_v40 = vpop.eup %2313 }
 0x3cc   :  { %v2316_v11 = vpop.eup %2315  ;;  %v593_v20 = vmul.f32 %v2314_v40, %v2720_v31 }
 0x3cd   :  { %v613_v13 = vadd.f32 1.0, %v2316_v11 }
 0x3cf   :  { %2317 = vrcp.f32 %v613_v13 }
 0x3dc   :  { %v2318_v2 = vpop.eup %2317 }
 0x3dd   :  { %v617_v24 = vmul.f32 %v2318_v2, %v2724_v35 }
 0x40f   :  { %v596_v8 = vpop.permute.xlu0 %595 }
 0x410   :  { %v598_v10 = vmul.f32 %v2314_v40, %v596_v8 }
 0x412   :  { %600 = vrot.lane.b32.xlu0 %v598_v10, %s2499_s2 }
 0x42d   :  { %v620_v15 = vpop.permute.xlu1 %619 }
 0x42e   :  { %v622_v18 = vmul.f32 %v2318_v2, %v620_v15 }
 0x430   :  { %624 = vrot.lane.b32.xlu1 %v622_v18, %s2499_s2 }
 0x484   :  { %v601_v21 = vpop.permute.xlu0 %600 }
 0x485   :  { %v2761_v22 = vadd.f32 %v601_v21, %v593_v20 }
 0x487   :  { %2319 = vtanh.f32 %v2761_v22 }
 0x494   :  { %v2320_v23 = vpop.eup %2319 }
 0x495   :  { %606 = vrot.lane.b32.xlu0 %v2320_v23, %s2498_s0 }
 0x4a2   :  { %v625_v25 = vpop.permute.xlu1 %624 }
 0x4a3   :  { %v2766_v26 = vadd.f32 %v625_v25, %v617_v24 }
 0x4a5   :  { %2321 = vtanh.f32 %v2766_v26 }
 0x4b2   :  { %v2322_v27 = vpop.eup %2321 }
 0x4b3   :  { %630 = vrot.lane.b32.xlu1 %v2322_v27, %s2498_s0 }
 0x507   :  { %v607_v28 = vpop.permute.xlu0 %606 }
 0x508   :  { %v609_v29 = vmul.f32 %v2314_v40, %v607_v28 }
 0x50a   :  { %635 = vrot.lane.b32.xlu0 %v609_v29, %s2499_s2 }
 0x525   :  { %v631_v30 = vpop.permute.xlu1 %630 }
 0x526   :  { %v633_v31 = vmul.f32 %v2318_v2, %v631_v30 }
 0x528   :  { %641 = vrot.lane.b32.xlu1 %v633_v31, %s2499_s2 }
 0x57c   :  { %v636_v32 = vpop.permute.xlu0 %635 }
 0x57d   :  { %639 = vst.msk [vmem:[#allocation4 + $0x8] sm:$0xff] %vm67_vm1, %v636_v32  ;;  %2158 = vmatmul.mubr.msk.f32.vlgmr.msra.gmra.mxu0 %vm67_vm1, %v636_v32 }
 0x57e   :  { %2172 = vmatpush3.msra.mxu0 %v2568_v5  ;;  %2179 = vmatprep.mubr.msk.f32.mxu0 %vm2497_vm0, %v2496_v0 }
 0x57f   :  { %2173 = vmatprep.subr.mxu0 %v2496_v0 }
 0x580   :  { %2174 = vmatpush3.msra.mxu0 %v2577_v7 }
 0x581   :  { %2175 = vmatprep.subr.mxu0 %v2496_v0 }
 0x582   :  { %2176 = vmatpush3.msra.mxu0 %v2586_v9 }
 0x583   :  { %2177 = vmatprep.subr.mxu0 %v2496_v0 }
 0x584   :  { %2178 = vmatpush3.msra.mxu0 %v2599_v12 }
 0x585   :  { %2193 = vmatprep.subr.mxu0 %v2496_v0 }
 0x59a   :  { %v642_v33 = vpop.permute.xlu1 %641 }
 0x59b   :  { %645 = vst.msk [vmem:[#allocation5 + $0x30] sm:$0xff] %vm67_vm1, %v642_v33  ;;  %2169 = vmatmul.mubr.msk.f32.vlgmr.msra.gmra.mxu1 %vm67_vm1, %v642_v33 }
 0x59c   :  { %2183 = vmatpush3.msra.mxu1 %v2607_v14  ;;  %2190 = vmatprep.mubr.msk.f32.mxu1 %vm2497_vm0, %v2496_v0 }
 0x59d   :  { %2184 = vmatprep.subr.mxu1 %v2496_v0 }
 0x59e   :  { %2185 = vmatpush3.msra.mxu1 %v2616_v16 }
 0x59f   :  { %2186 = vmatprep.subr.mxu1 %v2496_v0 }
 0x5a0   :  { %2187 = vmatpush3.msra.mxu1 %v2622_v17 }
 0x5a1   :  { %2188 = vmatprep.subr.mxu1 %v2496_v0 }
 0x5a2   :  { %2189 = vmatpush3.msra.mxu1 %v2632_v19 }
 0x5a3   :  { %2204 = vmatprep.subr.mxu1 %v2496_v0 }
 0x63d   :  { %v716_v34 = vpop.f32.mrf.mxu0 }
 0x63e   :  { %v720_v35 = vadd.f32 %v716_v34, %v2694_v44 }
 0x63f   :  { %v2159_v36 = vpop.f32.mrf.mxu0 }
 0x640   :  { %2323 = vtanh.f32 %v720_v35  ;;  %v2003_v46 = vmul.f32 -1.442695, %v720_v35 }
 0x64d   :  { %v2324_v38 = vpop.eup %2323 }
 0x64e   :  { %805 = vrot.lane.b32.xlu0 %v2324_v38, %s2498_s0 }
 0x65b   :  { %v791_v39 = vpop.f32.mrf.mxu1 }
 0x65c   :  { %v795_v41 = vadd.f32 %v791_v39, %v2709_v61 }
 0x65d   :  { %v2170_v43 = vpop.f32.mrf.mxu1 }
 0x65e   :  { %2325 = vtanh.f32 %v795_v41  ;;  %v2004_v51 = vmul.f32 -1.442695, %v795_v41 }
 0x65f   :  { %2327 = vpow2.f32 %v2003_v46 }
 0x66b   :  { %v2326_v45 = vpop.eup %2325 }
 0x66c   :  { %829 = vrot.lane.b32.xlu1 %v2326_v45, %s2498_s0  ;;  %v2328_v48 = vpop.eup %2327 }
 0x66d   :  { %v799_v49 = vadd.f32 1.0, %v2328_v48 }
 0x66f   :  { %2329 = vrcp.f32 %v799_v49 }
 0x670   :  { %2331 = vpow2.f32 %v2004_v51 }
 0x67c   :  { %v2330_v44 = vpop.eup %2329 }
 0x67d   :  { %v2332_v56 = vpop.eup %2331  ;;  %v803_v1 = vmul.f32 %v2330_v44, %v2761_v22 }
 0x67e   :  { %v823_v58 = vadd.f32 1.0, %v2332_v56 }
 0x680   :  { %2333 = vrcp.f32 %v823_v58 }
 0x68d   :  { %v2334_v61 = vpop.eup %2333 }
 0x68e   :  { %v827_v8 = vmul.f32 %v2334_v61, %v2766_v26 }
 0x6c0   :  { %v806_v53 = vpop.permute.xlu0 %805 }
 0x6c1   :  { %v808_v55 = vmul.f32 %v2330_v44, %v806_v53 }
 0x6c3   :  { %810 = vrot.lane.b32.xlu0 %v808_v55, %s2499_s2 }
 0x6de   :  { %v830_v60 = vpop.permute.xlu1 %829 }
 0x6df   :  { %v832_v62 = vmul.f32 %v2334_v61, %v830_v60 }
 0x6e1   :  { %834 = vrot.lane.b32.xlu1 %v832_v62, %s2499_s2 }
 0x735   :  { %v811_v3 = vpop.permute.xlu0 %810 }
 0x736   :  { %v2803_v6 = vadd.f32 %v811_v3, %v803_v1 }
 0x738   :  { %2335 = vtanh.f32 %v2803_v6 }
 0x745   :  { %v2336_v40 = vpop.eup %2335 }
 0x746   :  { %816 = vrot.lane.b32.xlu0 %v2336_v40, %s2498_s0 }
 0x753   :  { %v835_v10 = vpop.permute.xlu1 %834 }
 0x754   :  { %v2808_v11 = vadd.f32 %v835_v10, %v827_v8 }
 0x756   :  { %2337 = vtanh.f32 %v2808_v11 }
 0x763   :  { %v2338_v13 = vpop.eup %2337 }
 0x764   :  { %840 = vrot.lane.b32.xlu1 %v2338_v13, %s2498_s0 }
 0x7b8   :  { %v817_v2 = vpop.permute.xlu0 %816 }
 0x7b9   :  { %v819_v15 = vmul.f32 %v2330_v44, %v817_v2 }
 0x7bb   :  { %845 = vrot.lane.b32.xlu0 %v819_v15, %s2499_s2 }
 0x7d6   :  { %v841_v18 = vpop.permute.xlu1 %840 }
 0x7d7   :  { %v843_v20 = vmul.f32 %v2334_v61, %v841_v18 }
 0x7d9   :  { %851 = vrot.lane.b32.xlu1 %v843_v20, %s2499_s2 }
 0x82d   :  { %v846_v21 = vpop.permute.xlu0 %845 }
 0x82e   :  { %849 = vst.msk [vmem:[#allocation4 + $0x10] sm:$0xff] %vm67_vm1, %v846_v21  ;;  %2180 = vmatmul.mubr.msk.f32.vlgmr.msra.gmra.mxu0 %vm67_vm1, %v846_v21 }
 0x82f   :  { %2194 = vmatpush3.msra.mxu0 %v2568_v5  ;;  %2201 = vmatprep.mubr.msk.f32.mxu0 %vm2497_vm0, %v2496_v0 }
 0x830   :  { %2195 = vmatprep.subr.mxu0 %v2496_v0 }
 0x831   :  { %2196 = vmatpush3.msra.mxu0 %v2577_v7 }
 0x832   :  { %2197 = vmatprep.subr.mxu0 %v2496_v0 }
 0x833   :  { %2198 = vmatpush3.msra.mxu0 %v2586_v9 }
 0x834   :  { %2199 = vmatprep.subr.mxu0 %v2496_v0 }
 0x835   :  { %2200 = vmatpush3.msra.mxu0 %v2599_v12 }
 0x836   :  { %2215 = vmatprep.subr.mxu0 %v2496_v0 }
 0x84b   :  { %v852_v22 = vpop.permute.xlu1 %851 }
 0x84c   :  { %855 = vst.msk [vmem:[#allocation5 + $0x28] sm:$0xff] %vm67_vm1, %v852_v22  ;;  %2191 = vmatmul.mubr.msk.f32.vlgmr.msra.gmra.mxu1 %vm67_vm1, %v852_v22 }
 0x84d   :  { %2205 = vmatpush3.msra.mxu1 %v2607_v14  ;;  %2212 = vmatprep.mubr.msk.f32.mxu1 %vm2497_vm0, %v2496_v0 }
 0x84e   :  { %2206 = vmatprep.subr.mxu1 %v2496_v0 }
 0x84f   :  { %2207 = vmatpush3.msra.mxu1 %v2616_v16 }
 0x850   :  { %2208 = vmatprep.subr.mxu1 %v2496_v0 }
 0x851   :  { %2209 = vmatpush3.msra.mxu1 %v2622_v17 }
 0x852   :  { %2210 = vmatprep.subr.mxu1 %v2496_v0 }
 0x853   :  { %2211 = vmatpush3.msra.mxu1 %v2632_v19 }
 0x854   :  { %2226 = vmatprep.subr.mxu1 %v2496_v0 }
 0x8ee   :  { %v926_v23 = vpop.f32.mrf.mxu0 }
 0x8ef   :  { %v930_v24 = vadd.f32 %v926_v23, %v2698_v50 }
 0x8f0   :  { %v2181_v25 = vpop.f32.mrf.mxu0 }
 0x8f1   :  { %2339 = vtanh.f32 %v930_v24  ;;  %v2007_v31 = vmul.f32 -1.442695, %v930_v24 }
 0x8fe   :  { %v2340_v26 = vpop.eup %2339 }
 0x8ff   :  { %1015 = vrot.lane.b32.xlu0 %v2340_v26, %s2498_s0 }
 0x90c   :  { %v1001_v27 = vpop.f32.mrf.mxu1 }
 0x90d   :  { %v1005_v28 = vadd.f32 %v1001_v27, %v2704_v57 }
 0x90e   :  { %v2192_v29 = vpop.f32.mrf.mxu1 }
 0x90f   :  { %2341 = vtanh.f32 %v1005_v28  ;;  %v2008_v34 = vmul.f32 -1.442695, %v1005_v28 }
 0x910   :  { %2343 = vpow2.f32 %v2007_v31 }
 0x91c   :  { %v2342_v30 = vpop.eup %2341 }
 0x91d   :  { %1039 = vrot.lane.b32.xlu1 %v2342_v30, %s2498_s0  ;;  %v2344_v32 = vpop.eup %2343 }
 0x91e   :  { %v1009_v33 = vadd.f32 1.0, %v2344_v32 }
 0x920   :  { %2345 = vrcp.f32 %v1009_v33 }
 0x921   :  { %2347 = vpow2.f32 %v2008_v34 }
 0x92d   :  { %v2346_v50 = vpop.eup %2345 }
 0x92e   :  { %v2348_v38 = vpop.eup %2347  ;;  %v1013_v45 = vmul.f32 %v2346_v50, %v2803_v6 }
 0x92f   :  { %v1033_v39 = vadd.f32 1.0, %v2348_v38 }
 0x931   :  { %2349 = vrcp.f32 %v1033_v39 }
 0x93e   :  { %v2350_v57 = vpop.eup %2349 }
 0x93f   :  { %v1037_v51 = vmul.f32 %v2350_v57, %v2808_v11 }
 0x971   :  { %v1016_v35 = vpop.permute.xlu0 %1015 }
 0x972   :  { %v1018_v36 = vmul.f32 %v2346_v50, %v1016_v35 }
 0x974   :  { %1020 = vrot.lane.b32.xlu0 %v1018_v36, %s2499_s2 }
 0x98f   :  { %v1040_v41 = vpop.permute.xlu1 %1039 }
 0x990   :  { %v1042_v43 = vmul.f32 %v2350_v57, %v1040_v41 }
 0x992   :  { %1044 = vrot.lane.b32.xlu1 %v1042_v43, %s2499_s2 }
 0x9e6   :  { %v1021_v46 = vpop.permute.xlu0 %1020 }
 0x9e7   :  { %v2845_v48 = vadd.f32 %v1021_v46, %v1013_v45 }
 0x9e9   :  { %2351 = vtanh.f32 %v2845_v48 }
 0x9f6   :  { %v2352_v49 = vpop.eup %2351 }
 0x9f7   :  { %1026 = vrot.lane.b32.xlu0 %v2352_v49, %s2498_s0 }
 0xa04   :  { %v1045_v44 = vpop.permute.xlu1 %1044 }
 0xa05   :  { %v2850_v53 = vadd.f32 %v1045_v44, %v1037_v51 }
 0xa07   :  { %2353 = vtanh.f32 %v2850_v53 }
 0xa14   :  { %v2354_v55 = vpop.eup %2353 }
 0xa15   :  { %1050 = vrot.lane.b32.xlu1 %v2354_v55, %s2498_s0 }
 0xa69   :  { %v1027_v56 = vpop.permute.xlu0 %1026 }
 0xa6a   :  { %v1029_v58 = vmul.f32 %v2346_v50, %v1027_v56 }
 0xa6c   :  { %1055 = vrot.lane.b32.xlu0 %v1029_v58, %s2499_s2 }
 0xa87   :  { %v1051_v61 = vpop.permute.xlu1 %1050 }
 0xa88   :  { %v1053_v60 = vmul.f32 %v2350_v57, %v1051_v61 }
 0xa8a   :  { %1061 = vrot.lane.b32.xlu1 %v1053_v60, %s2499_s2 }
 0xade   :  { %v1056_v62 = vpop.permute.xlu0 %1055 }
 0xadf   :  { %1059 = vst.msk [vmem:[#allocation4 + $0x18] sm:$0xff] %vm67_vm1, %v1056_v62  ;;  %2202 = vmatmul.mubr.msk.f32.vlgmr.msra.gmra.mxu0 %vm67_vm1, %v1056_v62 }
 0xae0   :  { %2216 = vmatpush3.msra.mxu0 %v2568_v5  ;;  %2223 = vmatprep.mubr.msk.f32.mxu0 %vm2497_vm0, %v2496_v0 }
 0xae1   :  { %2217 = vmatprep.subr.mxu0 %v2496_v0 }
 0xae2   :  { %2218 = vmatpush3.msra.mxu0 %v2577_v7 }
 0xae3   :  { %2219 = vmatprep.subr.mxu0 %v2496_v0 }
 0xae4   :  { %2220 = vmatpush3.msra.mxu0 %v2586_v9 }
 0xae5   :  { %2221 = vmatprep.subr.mxu0 %v2496_v0 }
 0xae6   :  { %2222 = vmatpush3.msra.mxu0 %v2599_v12 }
 0xae7   :  { %2237 = vmatprep.subr.mxu0 %v2496_v0 }
 0xafc   :  { %v1062_v1 = vpop.permute.xlu1 %1061 }
 0xafd   :  { %1065 = vst.msk [vmem:[#allocation5 + $0x20] sm:$0xff] %vm67_vm1, %v1062_v1  ;;  %2213 = vmatmul.mubr.msk.f32.vlgmr.msra.gmra.mxu1 %vm67_vm1, %v1062_v1 }
 0xafe   :  { %2227 = vmatpush3.msra.mxu1 %v2607_v14  ;;  %2234 = vmatprep.mubr.msk.f32.mxu1 %vm2497_vm0, %v2496_v0 }
 0xaff   :  { %2228 = vmatprep.subr.mxu1 %v2496_v0 }
 0xb00   :  { %2229 = vmatpush3.msra.mxu1 %v2616_v16 }
 0xb01   :  { %2230 = vmatprep.subr.mxu1 %v2496_v0 }
 0xb02   :  { %2231 = vmatpush3.msra.mxu1 %v2622_v17 }
 0xb03   :  { %2232 = vmatprep.subr.mxu1 %v2496_v0 }
 0xb04   :  { %2233 = vmatpush3.msra.mxu1 %v2632_v19  ;;  %v1916_v41 = vld [vmem:[#allocation5 + $0x20] sm:$0xff] }
 0xb05   :  { %2248 = vmatprep.subr.mxu1 %v2496_v0 }
 0xb9f   :  { %v1136_v3 = vpop.f32.mrf.mxu0 }
 0xba0   :  { %v1140_v6 = vadd.f32 %v1136_v3, %v2702_v54 }
 0xba1   :  { %v2203_v40 = vpop.f32.mrf.mxu0 }
 0xba2   :  { %2355 = vtanh.f32 %v1140_v6  ;;  %v2011_v15 = vmul.f32 -1.442695, %v1140_v6 }
 0xbaf   :  { %v2356_v8 = vpop.eup %2355 }
 0xbb0   :  { %1225 = vrot.lane.b32.xlu0 %v2356_v8, %s2498_s0 }
 0xbbd   :  { %v1211_v10 = vpop.f32.mrf.mxu1 }
 0xbbe   :  { %v1215_v11 = vadd.f32 %v1211_v10, %v2700_v52 }
 0xbbf   :  { %v2214_v13 = vpop.f32.mrf.mxu1 }
 0xbc0   :  { %2357 = vtanh.f32 %v1215_v11  ;;  %v2012_v21 = vmul.f32 -1.442695, %v1215_v11 }
 0xbc1   :  { %2359 = vpow2.f32 %v2011_v15 }
 0xbcd   :  { %v2358_v2 = vpop.eup %2357 }
 0xbce   :  { %1249 = vrot.lane.b32.xlu1 %v2358_v2, %s2498_s0  ;;  %v2360_v18 = vpop.eup %2359 }
 0xbcf   :  { %v1219_v20 = vadd.f32 1.0, %v2360_v18 }
 0xbd1   :  { %2361 = vrcp.f32 %v1219_v20 }
 0xbd2   :  { %2363 = vpow2.f32 %v2012_v21 }
 0xbde   :  { %v2362_v54 = vpop.eup %2361 }
 0xbdf   :  { %v2364_v24 = vpop.eup %2363  ;;  %v1223_v28 = vmul.f32 %v2362_v54, %v2845_v48 }
 0xbe0   :  { %v1243_v25 = vadd.f32 1.0, %v2364_v24  ;;  %v2420_v24 = vld [vmem:[%s3045_s3 + $0x10] sm:$0xff] }
 0xbe2   :  { %2365 = vrcp.f32 %v1243_v25  ;;  %v2421_v25 = vld [vmem:[%s3045_s3 + $0x8] sm:$0xff] }
 0xbef   :  { %v2366_v52 = vpop.eup %2365 }
 0xbf0   :  { %v1247_v32 = vmul.f32 %v2366_v52, %v2850_v53 }
 0xc22   :  { %v1226_v22 = vpop.permute.xlu0 %1225 }
 0xc23   :  { %v1228_v23 = vmul.f32 %v2362_v54, %v1226_v22 }
 0xc25   :  { %1230 = vrot.lane.b32.xlu0 %v1228_v23, %s2499_s2  ;;  %v2419_v23 = vld [vmem:[%s3045_s3 + $0x18] sm:$0xff] }
 0xc40   :  { %v1250_v26 = vpop.permute.xlu1 %1249 }
 0xc41   :  { %v1252_v27 = vmul.f32 %v2366_v52, %v1250_v26 }
 0xc43   :  { %1254 = vrot.lane.b32.xlu1 %v1252_v27, %s2499_s2  ;;  %v2422_v27 = vld [vmem:[%s3045_s3] sm:$0xff] }
 0xc97   :  { %v1231_v29 = vpop.permute.xlu0 %1230 }
 0xc98   :  { %v2887_v30 = vadd.f32 %v1231_v29, %v1223_v28 }
 0xc9a   :  { %2367 = vtanh.f32 %v2887_v30 }
 0xca7   :  { %v2368_v31 = vpop.eup %2367 }
 0xca8   :  { %1236 = vrot.lane.b32.xlu0 %v2368_v31, %s2498_s0  ;;  %v2424_v31 = vld [vmem:[#allocation6 + $0x10] sm:$0xff] }
 0xcb5   :  { %v1255_v33 = vpop.permute.xlu1 %1254 }
 0xcb6   :  { %v2892_v34 = vadd.f32 %v1255_v33, %v1247_v32  ;;  %v2425_v32 = vld [vmem:[#allocation6 + $0x8] sm:$0xff]  ;;  %v1906_v33 = vld [vmem:[#allocation4 + $0x10] sm:$0xff] }
 0xcb8   :  { %2369 = vtanh.f32 %v2892_v34 }
 0xcc5   :  { %v2370_v50 = vpop.eup %2369 }
 0xcc6   :  { %1260 = vrot.lane.b32.xlu1 %v2370_v50, %s2498_s0  ;;  %v2426_v50 = vld [vmem:[#allocation6] sm:$0xff] }
 0xd1a   :  { %v1237_v35 = vpop.permute.xlu0 %1236 }
 0xd1b   :  { %v1239_v36 = vmul.f32 %v2362_v54, %v1237_v35 }
 0xd1d   :  { %1265 = vrot.lane.b32.xlu0 %v1239_v36, %s2499_s2 }
 0xd38   :  { %v1261_v38 = vpop.permute.xlu1 %1260 }
 0xd39   :  { %v1263_v39 = vmul.f32 %v2366_v52, %v1261_v38  ;;  %v1917_v52 = vld [vmem:[#allocation5 + $0x28] sm:$0xff] }
 0xd3b   :  { %1271 = vrot.lane.b32.xlu1 %v1263_v39, %s2499_s2 }
 0xd8f   :  { %v1266_v57 = vpop.permute.xlu0 %1265 }
 0xd90   :  { %1269 = vst.msk [vmem:[#allocation4 + $0x20] sm:$0xff] %vm67_vm1, %v1266_v57  ;;  %2224 = vmatmul.mubr.msk.f32.vlgmr.msra.gmra.mxu0 %vm67_vm1, %v1266_v57 }
 0xd91   :  { %2238 = vmatpush3.msra.mxu0 %v2568_v5  ;;  %2245 = vmatprep.mubr.msk.f32.mxu0 %vm2497_vm0, %v2496_v0 }
 0xd92   :  { %2239 = vmatprep.subr.mxu0 %v2496_v0 }
 0xd93   :  { %2240 = vmatpush3.msra.mxu0 %v2577_v7  ;;  %v1907_v7 = vld [vmem:[#allocation4 + $0x18] sm:$0xff] }
 0xd94   :  { %2241 = vmatprep.subr.mxu0 %v2496_v0 }
 0xd95   :  { %2242 = vmatpush3.msra.mxu0 %v2586_v9 }
 0xd96   :  { %2243 = vmatprep.subr.mxu0 %v2496_v0 }
 0xd97   :  { %v1908_v43 = vld [vmem:[#allocation4 + $0x20] sm:$0xff]  ;;  %2244 = vmatpush3.msra.mxu0 %v2599_v12 }
 0xd98   :  { %v1924_v45 = vadd.f32 %v1916_v41, %v1908_v43  ;;  %2259 = vmatprep.subr.mxu0 %v2496_v0 }
 0xd9a   :  { %1932 = vst.msk [vmem:[%s3047_s5 + $0x20] sm:$0xff] %vm67_vm1, %v1924_v45 }
 0xdad   :  { %v1272_v5 = vpop.permute.xlu1 %1271 }
 0xdae   :  { %1275 = vst.msk [vmem:[#allocation5 + $0x18] sm:$0xff] %vm67_vm1, %v1272_v5  ;;  %2235 = vmatmul.mubr.msk.f32.vlgmr.msra.gmra.mxu1 %vm67_vm1, %v1272_v5 }
 0xdaf   :  { %2249 = vmatpush3.msra.mxu1 %v2607_v14  ;;  %2256 = vmatprep.mubr.msk.f32.mxu1 %vm2497_vm0, %v2496_v0 }
 0xdb0   :  { %2250 = vmatprep.subr.mxu1 %v2496_v0 }
 0xdb1   :  { %2251 = vmatpush3.msra.mxu1 %v2616_v16 }
 0xdb2   :  { %2252 = vmatprep.subr.mxu1 %v2496_v0 }
 0xdb3   :  { %2253 = vmatpush3.msra.mxu1 %v2622_v17 }
 0xdb4   :  { %2254 = vmatprep.subr.mxu1 %v2496_v0 }
 0xdb5   :  { %v1915_v9 = vld [vmem:[#allocation5 + $0x18] sm:$0xff]  ;;  %2255 = vmatpush3.msra.mxu1 %v2632_v19 }
 0xdb6   :  { %v1923_v12 = vadd.f32 %v1915_v9, %v1907_v7  ;;  %2270 = vmatprep.subr.mxu1 %v2496_v0 }
 0xdb8   :  { %1931 = vst.msk [vmem:[%s3047_s5 + $0x18] sm:$0xff] %vm67_vm1, %v1923_v12 }
 0xe50   :  { %v1346_v14 = vpop.f32.mrf.mxu0 }
 0xe51   :  { %v1350_v16 = vadd.f32 %v1346_v14, %v2707_v59 }
 0xe52   :  { %v2225_v46 = vpop.f32.mrf.mxu0 }
 0xe53   :  { %2371 = vtanh.f32 %v1350_v16  ;;  %v2015_v44 = vmul.f32 -1.442695, %v1350_v16 }
 0xe60   :  { %v2372_v17 = vpop.eup %2371 }
 0xe61   :  { %1435 = vrot.lane.b32.xlu0 %v2372_v17, %s2498_s0 }
 0xe6e   :  { %v1421_v48 = vpop.f32.mrf.mxu1 }
 0xe6f   :  { %v1425_v49 = vadd.f32 %v1421_v48, %v2696_v47 }
 0xe70   :  { %v2236_v19 = vpop.f32.mrf.mxu1 }
 0xe71   :  { %2373 = vtanh.f32 %v1425_v49  ;;  %v2016_v56 = vmul.f32 -1.442695, %v1425_v49 }
 0xe72   :  { %2375 = vpow2.f32 %v2015_v44 }
 0xe7e   :  { %v2374_v51 = vpop.eup %2373 }
 0xe7f   :  { %1459 = vrot.lane.b32.xlu1 %v2374_v51, %s2498_s0  ;;  %v2376_v53 = vpop.eup %2375 }
 0xe80   :  { %v1429_v55 = vadd.f32 1.0, %v2376_v53 }
 0xe82   :  { %2377 = vrcp.f32 %v1429_v55 }
 0xe83   :  { %2379 = vpow2.f32 %v2016_v56 }
 0xe8f   :  { %v2378_v59 = vpop.eup %2377 }
 0xe90   :  { %v2380_v60 = vpop.eup %2379  ;;  %v1433_v6 = vmul.f32 %v2378_v59, %v2887_v30  ;;  %v2423_v30 = vld [vmem:[#allocation6 + $0x18] sm:$0xff] }
 0xe91   :  { %v1453_v62 = vadd.f32 1.0, %v2380_v60 }
 0xe93   :  { %2381 = vrcp.f32 %v1453_v62 }
 0xea0   :  { %v2382_v47 = vpop.eup %2381 }
 0xea1   :  { %v1457_v11 = vmul.f32 %v2382_v47, %v2892_v34 }
 0xed3   :  { %v1436_v58 = vpop.permute.xlu0 %1435 }
 0xed4   :  { %v1438_v61 = vmul.f32 %v2378_v59, %v1436_v58 }
 0xed6   :  { %1440 = vrot.lane.b32.xlu0 %v1438_v61, %s2499_s2 }
 0xef1   :  { %v1460_v1 = vpop.permute.xlu1 %1459 }
 0xef2   :  { %v1462_v3 = vmul.f32 %v2382_v47, %v1460_v1 }
 0xef4   :  { %1464 = vrot.lane.b32.xlu1 %v1462_v3, %s2499_s2  ;;  %v1918_v3 = vld [vmem:[#allocation5 + $0x30] sm:$0xff] }
 0xf48   :  { %v1441_v40 = vpop.permute.xlu0 %1440 }
 0xf49   :  { %v2937_v8 = vadd.f32 %v1441_v40, %v1433_v6 }
 0xf4b   :  { %2383 = vtanh.f32 %v2937_v8 }
 0xf58   :  { %v2384_v10 = vpop.eup %2383 }
 0xf59   :  { %1446 = vrot.lane.b32.xlu0 %v2384_v10, %s2498_s0  ;;  %v1905_v10 = vld [vmem:[#allocation4 + $0x8] sm:$0xff] }
 0xf66   :  { %v1465_v13 = vpop.permute.xlu1 %1464 }
 0xf67   :  { %v2942_v2 = vadd.f32 %v1465_v13, %v1457_v11 }
 0xf69   :  { %2385 = vtanh.f32 %v2942_v2 }
 0xf76   :  { %v2386_v15 = vpop.eup %2385 }
 0xf77   :  { %1470 = vrot.lane.b32.xlu1 %v2386_v15, %s2498_s0 }
 0xfcb   :  { %v1447_v18 = vpop.permute.xlu0 %1446 }
 0xfcc   :  { %v1449_v20 = vmul.f32 %v2378_v59, %v1447_v18 }
 0xfce   :  { %1475 = vrot.lane.b32.xlu0 %v1449_v20, %s2499_s2 }
 0xfe9   :  { %v1471_v21 = vpop.permute.xlu1 %1470 }
 0xfea   :  { %v1473_v54 = vmul.f32 %v2382_v47, %v1471_v21 }
 0xfec   :  { %1481 = vrot.lane.b32.xlu1 %v1473_v54, %s2499_s2 }
0x1040   :  { %v1476_v22 = vpop.permute.xlu0 %1475 }
0x1041   :  { %1479 = vst.msk [vmem:[#allocation4 + $0x28] sm:$0xff] %vm67_vm1, %v1476_v22  ;;  %2246 = vmatmul.mubr.msk.f32.vlgmr.msra.gmra.mxu0 %vm67_vm1, %v1476_v22 }
0x1042   :  { %2260 = vmatpush3.msra.mxu0 %v2419_v23  ;;  %2267 = vmatprep.mubr.msk.f32.mxu0 %vm2497_vm0, %v2496_v0 }
0x1043   :  { %2261 = vmatprep.subr.mxu0 %v2496_v0 }
0x1044   :  { %2262 = vmatpush3.msra.mxu0 %v2420_v24 }
0x1045   :  { %2263 = vmatprep.subr.mxu0 %v2496_v0 }
0x1046   :  { %2264 = vmatpush3.msra.mxu0 %v2421_v25 }
0x1047   :  { %2265 = vmatprep.subr.mxu0 %v2496_v0 }
0x1048   :  { %v1909_v26 = vld [vmem:[#allocation4 + $0x28] sm:$0xff]  ;;  %2266 = vmatpush3.msra.mxu0 %v2422_v27 }
0x1049   :  { %v1925_v28 = vadd.f32 %v1917_v52, %v1909_v26 }
0x104b   :  { %1933 = vst.msk [vmem:[%s3047_s5 + $0x28] sm:$0xff] %vm67_vm1, %v1925_v28 }
0x105e   :  { %v1482_v29 = vpop.permute.xlu1 %1481 }
0x105f   :  { %1485 = vst.msk [vmem:[#allocation5 + $0x10] sm:$0xff] %vm67_vm1, %v1482_v29  ;;  %2257 = vmatmul.mubr.msk.f32.vlgmr.msra.gmra.mxu1 %vm67_vm1, %v1482_v29 }
0x1060   :  { %2271 = vmatpush3.msra.mxu1 %v2423_v30  ;;  %2278 = vmatprep.mubr.msk.f32.mxu1 %vm2497_vm0, %v2496_v0 }
0x1061   :  { %2272 = vmatprep.subr.mxu1 %v2496_v0 }
0x1062   :  { %2273 = vmatpush3.msra.mxu1 %v2424_v31 }
0x1063   :  { %2274 = vmatprep.subr.mxu1 %v2496_v0 }
0x1064   :  { %2275 = vmatpush3.msra.mxu1 %v2425_v32 }
0x1065   :  { %2276 = vmatprep.subr.mxu1 %v2496_v0 }
0x1066   :  { %v1914_v34 = vld [vmem:[#allocation5 + $0x10] sm:$0xff]  ;;  %2277 = vmatpush3.msra.mxu1 %v2426_v50 }
0x1067   :  { %v1922_v35 = vadd.f32 %v1914_v34, %v1906_v33 }
0x1069   :  { %1930 = vst.msk [vmem:[%s3047_s5 + $0x10] sm:$0xff] %vm67_vm1, %v1922_v35 }
0x1101   :  { %v1556_v36 = vpop.f32.mrf.mxu0 }
0x1102   :  { %v1560_v38 = vadd.f32 %v1556_v36, %v2711_v63 }
0x1103   :  { %v2247_v39 = vpop.f32.mrf.mxu0 }
0x1104   :  { %2387 = vtanh.f32 %v1560_v38  ;;  %v2019_v5 = vmul.f32 -1.442695, %v1560_v38 }
0x1111   :  { %v2388_v57 = vpop.eup %2387 }
0x1112   :  { %1645 = vrot.lane.b32.xlu0 %v2388_v57, %s2498_s0 }
0x111f   :  { %v1631_v41 = vpop.f32.mrf.mxu1 }
0x1120   :  { %v1635_v0 = vadd.f32 %v1631_v41, %v2692_v42 }
0x1121   :  { %v2258_v43 = vpop.f32.mrf.mxu1 }
0x1122   :  { %2389 = vtanh.f32 %v1635_v0  ;;  %v2020_v12 = vmul.f32 -1.442695, %v1635_v0 }
0x1123   :  { %2391 = vpow2.f32 %v2019_v5 }
0x112f   :  { %v2390_v45 = vpop.eup %2389 }
0x1130   :  { %1669 = vrot.lane.b32.xlu1 %v2390_v45, %s2498_s0  ;;  %v2392_v7 = vpop.eup %2391 }
0x1131   :  { %v1639_v9 = vadd.f32 1.0, %v2392_v7 }
0x1133   :  { %2393 = vrcp.f32 %v1639_v9  ;;  %v1919_v9 = vld [vmem:[#allocation5 + $0x38] sm:$0xff] }
0x1134   :  { %2395 = vpow2.f32 %v2020_v12 }
0x1140   :  { %v2394_v63 = vpop.eup %2393 }
0x1141   :  { %v2396_v46 = vpop.eup %2395  ;;  %v1643_v19 = vmul.f32 %v2394_v63, %v2937_v8 }
0x1142   :  { %v1663_v17 = vadd.f32 1.0, %v2396_v46 }
0x1144   :  { %2397 = vrcp.f32 %v1663_v17 }
0x1151   :  { %v2398_v42 = vpop.eup %2397 }
0x1152   :  { %v1667_v55 = vmul.f32 %v2398_v42, %v2942_v2 }
0x1184   :  { %v1646_v14 = vpop.permute.xlu0 %1645 }
0x1185   :  { %v1648_v16 = vmul.f32 %v2394_v63, %v1646_v14 }
0x1187   :  { %1650 = vrot.lane.b32.xlu0 %v1648_v16, %s2499_s2 }
0x11a2   :  { %v1670_v48 = vpop.permute.xlu1 %1669 }
0x11a3   :  { %v1672_v49 = vmul.f32 %v2398_v42, %v1670_v48 }
0x11a5   :  { %1674 = vrot.lane.b32.xlu1 %v1672_v49, %s2499_s2 }
0x11f9   :  { %v1651_v51 = vpop.permute.xlu0 %1650 }
0x11fa   :  { %v1653_v44 = vadd.f32 %v1651_v51, %v1643_v19 }
0x11fc   :  { %2399 = vtanh.f32 %v1653_v44 }
0x1209   :  { %v2400_v53 = vpop.eup %2399 }
0x120a   :  { %1656 = vrot.lane.b32.xlu0 %v2400_v53, %s2498_s0 }
0x1217   :  { %v1675_v56 = vpop.permute.xlu1 %1674 }
0x1218   :  { %v1677_v59 = vadd.f32 %v1675_v56, %v1667_v55 }
0x121a   :  { %2401 = vtanh.f32 %v1677_v59 }
0x1227   :  { %v2402_v58 = vpop.eup %2401 }
0x1228   :  { %1680 = vrot.lane.b32.xlu1 %v2402_v58, %s2498_s0 }
0x127c   :  { %v1657_v61 = vpop.permute.xlu0 %1656 }
0x127d   :  { %v1659_v60 = vmul.f32 %v2394_v63, %v1657_v61 }
0x127f   :  { %1685 = vrot.lane.b32.xlu0 %v1659_v60, %s2499_s2 }
0x129a   :  { %v1681_v62 = vpop.permute.xlu1 %1680 }
0x129b   :  { %v1683_v47 = vmul.f32 %v2398_v42, %v1681_v62 }
0x129d   :  { %1691 = vrot.lane.b32.xlu1 %v1683_v47, %s2499_s2 }
0x12f1   :  { %v1686_v1 = vpop.permute.xlu0 %1685 }
0x12f2   :  { %1689 = vst.msk [vmem:[#allocation4 + $0x30] sm:$0xff] %vm67_vm1, %v1686_v1  ;;  %2268 = vmatmul.mubr.msk.f32.vlgmr.msra.gmra.mxu0 %vm67_vm1, %v1686_v1 }
0x12f9   :  { %v1910_v6 = vld [vmem:[#allocation4 + $0x30] sm:$0xff] }
0x12fa   :  { %v1926_v40 = vadd.f32 %v1918_v3, %v1910_v6 }
0x12fc   :  { %1934 = vst.msk [vmem:[%s3047_s5 + $0x30] sm:$0xff] %vm67_vm1, %v1926_v40 }
0x130f   :  { %v1692_v8 = vpop.permute.xlu1 %1691 }
0x1310   :  { %1695 = vst.msk [vmem:[#allocation5 + $0x8] sm:$0xff] %vm67_vm1, %v1692_v8  ;;  %2279 = vmatmul.mubr.msk.f32.vlgmr.msra.gmra.mxu1 %vm67_vm1, %v1692_v8 }
0x1317   :  { %v1913_v11 = vld [vmem:[#allocation5 + $0x8] sm:$0xff] }
0x1318   :  { %v1921_v13 = vadd.f32 %v1913_v11, %v1905_v10 }
0x131a   :  { %1929 = vst.msk [vmem:[%s3047_s5 + $0x8] sm:$0xff] %vm67_vm1, %v1921_v13 }
0x13b2   :  { %v1766_v2 = vpop.f32.mrf.mxu0 }
0x13b3   :  { %v1770_v15 = vadd.f32 %v1766_v2, %v2715_v4 }
0x13b4   :  { %v2269_v18 = vpop.f32.mrf.mxu0 }
0x13b5   :  { %2403 = vtanh.f32 %v1770_v15  ;;  %v2023_v24 = vmul.f32 -1.442695, %v1770_v15 }
0x13c2   :  { %v2404_v20 = vpop.eup %2403 }
0x13c3   :  { %1854 = vrot.lane.b32.xlu0 %v2404_v20, %s2498_s0 }
0x13d0   :  { %v1840_v21 = vpop.f32.mrf.mxu1 }
0x13d1   :  { %v1844_v54 = vadd.f32 %v1840_v21, %v2688_v37 }
0x13d2   :  { %v2280_v22 = vpop.f32.mrf.mxu1 }
0x13d3   :  { %2405 = vtanh.f32 %v1844_v54  ;;  %v2024_v26 = vmul.f32 -1.442695, %v1844_v54 }
0x13d4   :  { %2407 = vpow2.f32 %v2023_v24 }
0x13e0   :  { %v2406_v23 = vpop.eup %2405 }
0x13e1   :  { %1878 = vrot.lane.b32.xlu1 %v2406_v23, %s2498_s0  ;;  %v2408_v25 = vpop.eup %2407 }
0x13e2   :  { %v1848_v52 = vadd.f32 1.0, %v2408_v25 }
0x13e4   :  { %2409 = vrcp.f32 %v1848_v52 }
0x13e5   :  { %2411 = vpow2.f32 %v2024_v26 }
0x13f1   :  { %v2410_v4 = vpop.eup %2409 }
0x13f2   :  { %v2412_v29 = vpop.eup %2411  ;;  %v1852_v33 = vmul.f32 %v2410_v4, %v1653_v44 }
0x13f3   :  { %v1872_v30 = vadd.f32 1.0, %v2412_v29 }
0x13f5   :  { %2413 = vrcp.f32 %v1872_v30 }
0x1402   :  { %v2414_v37 = vpop.eup %2413 }
0x1403   :  { %v1876_v36 = vmul.f32 %v2414_v37, %v1677_v59 }
0x1435   :  { %v1855_v27 = vpop.permute.xlu0 %1854 }
0x1436   :  { %v1857_v28 = vmul.f32 %v2410_v4, %v1855_v27 }
0x1438   :  { %1859 = vrot.lane.b32.xlu0 %v1857_v28, %s2499_s2 }
0x1453   :  { %v1879_v31 = vpop.permute.xlu1 %1878 }
0x1454   :  { %v1881_v32 = vmul.f32 %v2414_v37, %v1879_v31 }
0x1456   :  { %1883 = vrot.lane.b32.xlu1 %v1881_v32, %s2499_s2 }
0x14aa   :  { %v1860_v34 = vpop.permute.xlu0 %1859 }
0x14ab   :  { %v1862_v50 = vadd.f32 %v1860_v34, %v1852_v33 }
0x14ad   :  { %2415 = vtanh.f32 %v1862_v50 }
0x14ba   :  { %v2416_v35 = vpop.eup %2415 }
0x14bb   :  { %1865 = vrot.lane.b32.xlu0 %v2416_v35, %s2498_s0 }
0x14c8   :  { %v1884_v38 = vpop.permute.xlu1 %1883 }
0x14c9   :  { %v1886_v39 = vadd.f32 %v1884_v38, %v1876_v36 }
0x14cb   :  { %2417 = vtanh.f32 %v1886_v39 }
0x14d8   :  { %v2418_v57 = vpop.eup %2417 }
0x14d9   :  { %1889 = vrot.lane.b32.xlu1 %v2418_v57, %s2498_s0  ;;  %s1957_s0 = sshll.u32 %s2501_s25, 4  ;;  %s1958_s0 = int_to_ptr.vmem [resolvable:$true] %s1957_s0 }
0x14da   :  { %s2447_s29 = scalar_lea.vmem %s1958_s0, 256  ;;  %p2452_p6 = scmp.lt.s32.totalorder %s1958_s0, %s1958_s0 }
0x14db   :  { %p2448_p5 = scmp.ne.s32.totalorder %s1958_s0, %s2447_s29  ;;  %p2453_p7 = scmp.lt.s32.totalorder %s2447_s29, %s2447_s29 }
0x14dd   :  { %p2454_p8 = por %p2453_p7, %p2452_p6 }
0x14df   :  { %p2455_p9 = pnand %p2454_p8, %p2448_p5 }
0x152d   :  { %v1866_v41 = vpop.permute.xlu0 %1865 }
0x152e   :  { %v1868_v0 = vmul.f32 %v2410_v4, %v1866_v41 }
0x1530   :  { %1894 = vrot.lane.b32.xlu0 %v1868_v0, %s2499_s2 }
0x1534   :  { %1940 = vrot.lane.b32.xlu0 %v1862_v50, %s2500_s22 }
0x154b   :  { %v1890_v43 = vpop.permute.xlu1 %1889 }
0x154c   :  { %v1892_v45 = vmul.f32 %v2414_v37, %v1890_v43 }
0x154e   :  { %1900 = vrot.lane.b32.xlu1 %v1892_v45, %s2499_s2  ;;  %s2502_s2 = smov [#allocation10]  }
0x154f   :  { %s1969_s26 = sshll.u32 %s2502_s2, 4  ;;  %s1970_s26 = int_to_ptr.vmem [resolvable:$true] %s1969_s26 }
0x1552   :  { %1945 = vrot.lane.b32.xlu1 %v1886_v39, %s2500_s22 }
0x15a2   :  { %v1895_v5 = vpop.permute.xlu0 %1894 }
0x15a3   :  { %1898 = vst.msk [vmem:[#allocation4 + $0x38] sm:$0xff] %vm67_vm1, %v1895_v5  ;;  %1936 = vst.msk [vmem:[#allocation9] sm:$0xff] %vm67_vm1, %v1895_v5 }
0x15a6   :  { %v1941_v7 = vpop.permute.xlu0 %1940 }
0x15a7   :  { %1943 = vst.msk [vmem:[#allocation10] sm:$0xff] %vm67_vm1, %v1941_v7 }
0x15aa   :  { %v1911_v12 = vld [vmem:[#allocation4 + $0x38] sm:$0xff] }
0x15ab   :  { %v1927_v63 = vadd.f32 %v1919_v9, %v1911_v12 }
0x15ad   :  { %1935 = vst.msk [vmem:[%s3047_s5 + $0x38] sm:$0xff] %vm67_vm1, %v1927_v63 }
0x15c0   :  { %v1901_v14 = vpop.permute.xlu1 %1900 }
0x15c1   :  { %1903 = vst.msk [vmem:[#allocation5] sm:$0xff] %vm67_vm1, %v1901_v14  ;;  %1938 = vst.msk [vmem:[#allocation9 + $0x8] sm:$0xff] %vm67_vm1, %v1901_v14 }
0x15c2   :  { %2458 = shalt.err (!%p2455_p9)
}
0x15c3   :  { %1963 = dma.vmem_to_hbm [thread:$0]  %s1958_s0, 256, %s3048_s6, [#allocation8], %s2494_s27, %s2494_s27, %s2495_s28  }
0x15c4   :  { %v1946_v16 = vpop.permute.xlu1 %1945  ;;  %s2467_s9 = scalar_lea.vmem %s1970_s26, 256  ;;  %p2472_p11 = scmp.lt.s32.totalorder %s1970_s26, %s1970_s26 }
0x15c5   :  { %1949 = vst.msk [vmem:[#allocation10 + $0x8] sm:$0xff] %vm67_vm1, %v1946_v16  ;;  %p2468_p10 = scmp.ne.s32.totalorder %s1970_s26, %s2467_s9  ;;  %p2473_p12 = scmp.lt.s32.totalorder %s2467_s9, %s2467_s9 }
0x15c7   :  { %p2474_p13 = por %p2473_p12, %p2472_p11 }
0x15c9   :  { %p2475_p0 = pnand %p2474_p13, %p2468_p10 }
0x15cb   :  { %2478 = shalt.err (!%p2475_p0)
}
0x15cc   :  { %1975 = dma.vmem_to_hbm [thread:$0]  %s1970_s26, 256, %s3049_s7, [#allocation11], %s2494_s27, %s2494_s27, %s2495_s28   ;;  %v1904_v46 = vld [vmem:[#allocation4] sm:$0xff] }
0x15cd   :  { %v1912_v17 = vld [vmem:[#allocation5] sm:$0xff] }
0x15ce   :  { %v1920_v42 = vadd.f32 %v1912_v17, %v1904_v46 }
0x15d0   :  { %1928 = vst.msk [vmem:[%s3047_s5] sm:$0xff] %vm67_vm1, %v1920_v42 }
0x15d1   :  { %2489 = dma.done.wait [#allocation8], 256  }
0x15d2   :  { %2490 = vsyncadd [#allocation8], 4294967040 }
0x15d3   :  { %2491 = dma.done.wait [#allocation11], 256  }
0x15d4   :  { %2492 = vsyncadd [#allocation11], 4294967040 }
0x15d5   :  { %1984 = vsyncpa [#allocation7], 1 }
0x15d6   :  { %1985 = vsyncpa [#allocation8], 1 }
0x15d7   :  { %1986 = vsyncpa [#allocation11], 1 }

</bundles_post_ra>
